<compile_context>
chip_gen: v7x
topology: tpu7x:2x2x1
jax: 0.10.0
libtpu: 0.0.40
codegen_flags: <defaults>
</compile_context>

<pallas_src>
import functools
import math

import jax
import jax.numpy as jnp
from jax import lax
from jax.experimental import pallas as pl
from jax.experimental.pallas import tpu as pltpu


GROUP = 128           # logical rows packed per lane-dense row
_MIN_GRID_STEPS = 4   # keep at least this many grid steps when shrinking tiles


def _chip_defaults():
    """Per-generation (tile cap, matmul precision)."""
    kind = ""
    try:
        kind = jax.devices()[0].device_kind.lower()
    except Exception:
        pass
    if "v5 lite" in kind or "v5e" in kind or "v5litepod" in kind:
        # v5e: 16 MiB default scoped VMEM; 197 TF/s MXU -> 6-pass f32 would flip
        # the kernel MXU-bound, 3-pass (HIGH) stays hidden under DMA.
        return 2048, lax.Precision.HIGH
    if "v6" in kind or "v7" in kind:
        # v6e/v7x: 32 MiB default scoped VMEM; MXU headroom -> exact f32 is free.
        return 4096, lax.Precision.HIGHEST
    return 2048, lax.Precision.HIGHEST


def _bins_mean_kernel(x_ref, w_ref, o_ref, *, precision):
    # x_ref: (TG, GROUP*K)    lane-dense packed rows (input dtype)
    # w_ref: (GROUP*K, GROUP) constant block-diagonal bins matrix, f32, resident
    # o_ref: (TG, GROUP)      lane-dense outputs (unmasked full-lane stores)
    o_ref[...] = jnp.dot(
        x_ref[...], w_ref[...],
        precision=precision,
        preferred_element_type=jnp.float32,
    ).astype(o_ref.dtype)


def bins_mean(inputs, bin_size=1.0, min_rating=1.0, max_rating=5.0,
              *, precision=None, tg_cap=None):
    """Pallas implementation of BinsMean.forward: sum(inputs * bins, dim=-1)."""
    # Robust bin count (avoids float-endpoint rounding of arange for
    # non-integer bin sizes); matches the PyTorch arange for the defaults.
    K = int(round((max_rating - min_rating) / bin_size)) + 1
    if inputs.shape[-1] != K:
        raise ValueError(
            f"last dim of inputs ({inputs.shape[-1]}) must equal number of "
            f"bins ({K})")

    default_tg_cap, default_prec = _chip_defaults()
    if tg_cap is None:
        tg_cap = default_tg_cap
    if precision is None:
        precision = default_prec

    dtype = inputs.dtype
    # Keep bins / W in f32 so non-bf16-representable bin values stay exact;
    # a bf16 input path still works (promoted in-kernel, DMA carries bf16 bytes).
    bins = min_rating + bin_size * jnp.arange(K, dtype=jnp.float32)
    eye = jnp.eye(GROUP, dtype=jnp.float32)
    # Block-diagonal weight: W[g*K + k, g] = bins[k]  -> (GROUP*K, GROUP)
    w = jnp.repeat(eye, K, axis=0) * jnp.tile(bins, GROUP)[:, None]

    lead_shape = inputs.shape[:-1]
    M = math.prod(lead_shape) if lead_shape else 1

    # Pack GROUP (=128) logical rows into each lane-dense row of width GROUP*K.
    # Only pad the logical-row count up to a multiple of GROUP (tiny); the grid
    # handles any ragged last tile itself (padding rows are sliced away below).
    # TODO(synk): ideally the producer emits the packed (rows, GROUP*K) layout
    # directly; the relayout copy here can dominate end-to-end cost.
    rows = pl.cdiv(M, GROUP)
    m_pad = rows * GROUP
    x_flat = inputs.reshape(M, K)
    if m_pad != M:
        x_flat = jnp.pad(x_flat, ((0, m_pad - M), (0, 0)))
    x_packed = x_flat.reshape(rows, GROUP * K)

    # Tile selection: biggest tile under the per-generation cap, but keep the
    # grid at >= ~_MIN_GRID_STEPS steps for pipelining / megacore sharding.
    if rows >= _MIN_GRID_STEPS * tg_cap:
        tg = tg_cap
    else:
        tg = min(tg_cap,
                 max(8, ((pl.cdiv(rows, _MIN_GRID_STEPS) + 7) // 8) * 8))
    grid = pl.cdiv(rows, tg)

    kernel = functools.partial(_bins_mean_kernel, precision=precision)
    out = pl.pallas_call(
        kernel,
        out_shape=jax.ShapeDtypeStruct((rows, GROUP), dtype),
        grid=(grid,),
        in_specs=[
            pl.BlockSpec((tg, GROUP * K), lambda i: (i, 0)),
            pl.BlockSpec((GROUP * K, GROUP), lambda i: (0, 0)),  # resident const
        ],
        out_specs=pl.BlockSpec((tg, GROUP), lambda i: (i, 0)),
        compiler_params=pltpu.CompilerParams(
            dimension_semantics=("parallel",)),
    )(x_packed, w)

    return out.reshape(m_pad)[:M].reshape(lead_shape)


if __name__ == "__main__":
    key = jax.random.PRNGKey(0)
    k1, k2, k3 = jax.random.split(key, 3)

    bins_ref = jnp.arange(1.0, 5.0 + 1.0, 1.0, dtype=jnp.float32)

    # Main case: batch=2, seq=8, n_bins=5 (bins = [1,2,3,4,5] with defaults).
    x = jax.nn.softmax(jax.random.normal(k1, (2, 8, 5), dtype=jnp.float32), axis=-1)
    out = jax.block_until_ready(bins_mean(x))
    ref = jnp.sum(x * bins_ref, axis=-1)
    assert out.shape == ref.shape == (2, 8), (out.shape, ref.shape)
    assert jnp.allclose(out, ref, atol=1e-5, rtol=1e-5)

    # Second case exercising the row-padding path (M not a multiple of 128).
    y = jax.nn.softmax(jax.random.normal(k2, (3, 37, 5), dtype=jnp.float32), axis=-1)
    out_y = jax.block_until_ready(bins_mean(y))
    ref_y = jnp.sum(y * bins_ref, axis=-1)
    assert out_y.shape == ref_y.shape == (3, 37)
    assert jnp.allclose(out_y, ref_y, atol=1e-5, rtol=1e-5)

    # Third case exercising a multi-step grid with a ragged last tile.
    z = jax.nn.softmax(jax.random.normal(k3, (4, 300, 5), dtype=jnp.float32), axis=-1)
    out_z = jax.block_until_ready(bins_mean(z))
    ref_z = jnp.sum(z * bins_ref, axis=-1)
    assert out_z.shape == ref_z.shape == (4, 300)
    assert jnp.allclose(out_z, ref_z, atol=1e-5, rtol=1e-5)

    print("KERNEL_OK")
</pallas_src>

<mosaic_0001>
module attributes {stable_mosaic.version = 11 : i64} {
  func.func @_bins_mean_kernel(%arg0: i32, %arg1: memref<8x640xf32, #tpu.memory_space<vmem>>, %arg2: memref<640x128xf32, #tpu.memory_space<vmem>>, %arg3: memref<8x128xf32, #tpu.memory_space<vmem>>) attributes {dimension_semantics = [#tpu.dimension_semantics<parallel>], iteration_bounds = array<i64: 1>, scalar_prefetch = 0 : i64, scratch_operands = 0 : i64, tpu.core_type = #tpu.core_type<tc>, window_params = [{transform_indices = @transform_0, window_bounds = array<i64: 8, 640>}, {pipeline_mode = #tpu.pipeline_mode<synchronous>, transform_indices = @transform_1, window_bounds = array<i64: 640, 128>}, {transform_indices = @transform_2, window_bounds = array<i64: 8, 128>}]} {
    %c0 = arith.constant 0 : index
    %c0_0 = arith.constant 0 : index
    %0 = vector.load %arg1[%c0, %c0_0] : memref<8x640xf32, #tpu.memory_space<vmem>>, vector<8x640xf32>
    %c0_1 = arith.constant 0 : index
    %c0_2 = arith.constant 0 : index
    %1 = vector.load %arg2[%c0_1, %c0_2] : memref<640x128xf32, #tpu.memory_space<vmem>>, vector<640x128xf32>
    %cst = arith.constant dense<0.000000e+00> : vector<8x128xf32>
    %2 = tpu.matmul %0, %1, %cst {dimension_numbers = #tpu.dot_dimension_numbers<[1], [0], [0], [1], [0, 0, 1, 1], [], []>, precision = #tpu.contract_precision<fp32>} : vector<8x640xf32>, vector<640x128xf32>, vector<8x128xf32> -> vector<8x128xf32>
    %c0_3 = arith.constant 0 : index
    %c0_4 = arith.constant 0 : index
    %3 = vector.load %arg3[%c0_3, %c0_4] : memref<8x128xf32, #tpu.memory_space<vmem>>, vector<8x128xf32>
    tpu.vector_store %arg3[%c0_3, %c0_4], %2 {strides = array<i32>} : memref<8x128xf32, #tpu.memory_space<vmem>>, vector<8x128xf32>,
    return
  }
  func.func @transform_0(%arg0: i32) -> (i32, i32) {
    %c0_i32 = arith.constant 0 : i32
    %c0_i32_0 = arith.constant 0 : i32
    return %arg0, %c0_i32 : i32, i32
  }
  func.func @transform_1(%arg0: i32) -> (i32, i32) {
    %c0_i32 = arith.constant 0 : i32
    %c0_i32_0 = arith.constant 0 : i32
    %c0_i32_1 = arith.constant 0 : i32
    return %c0_i32, %c0_i32_0 : i32, i32
  }
  func.func @transform_2(%arg0: i32) -> (i32, i32) {
    %c0_i32 = arith.constant 0 : i32
    %c0_i32_0 = arith.constant 0 : i32
    return %arg0, %c0_i32 : i32, i32
  }
}

</mosaic_0001>

<bundles_post_ra>
// kernel: tpu_custom_call.1
= control target key start
LH: loop header
LB: loop body
LE: loop exit
PB: predicated region body
PF: predicated region fallthrough
CT: control target
= control target key end

     0   :  { %7 = vsyncpa [#allocation3], 0  ;;  %s5472_s0 = inlined_call_operand.hbm [shape: f32[1,640], index: 0, kind: input, shape index: {}]   ;;  %s5473_s1 = inlined_call_operand.hbm [shape: f32[640,128], index: 1, kind: input, shape index: {}]   ;;  %s5474_s2 = inlined_call_operand.hbm [shape: f32[1,128], index: 2, kind: output, shape index: {}]  }
   0x1   :  { %8 = vsyncpa [#allocation6], 0 }
   0x2   :  { %9 = vsyncpa [#allocation4], 0 }
   0x3   :  { %14 = vsyncadd [#allocation3], 560  ;;  %s4010_s9 = smov [#allocation2]   ;;  %s3938_s13 = scalar_lea.hbm %s5472_s0, 80 }
   0x4   :  { %s15_s10 = sshll.u32 %s4010_s9, 4  ;;  %p3939_p0 = scmp.ne.s32.totalorder %s5472_s0, %s3938_s13  ;;  %s16_s10 = int_to_ptr.vmem [resolvable:$true] %s15_s10 }
   0x5   :  { %p3942_p1 = scmp.lt.u32.totalorder %s3938_s13, %s5472_s0 }
   0x7   :  { %p3944_p2 = pnand %p3942_p1, %p3939_p0 }
   0x9   :  { %3947 = shalt.err (!%p3944_p2)
}
   0xa   :  { %s3948_s18 = scalar_lea.vmem %s16_s10, 80  ;;  %s3952_s19 = scalar_lea.vmem %s16_s10, 640 }
   0xb   :  { %p3949_p3 = scmp.ne.s32.totalorder %s16_s10, %s3948_s18  ;;  %p3953_p4 = scmp.lt.s32.totalorder %s16_s10, %s16_s10 }
   0xc   :  { %p3954_p5 = scmp.lt.s32.totalorder %s3952_s19, %s3948_s18 }
   0xe   :  { %p3955_p6 = por %p3954_p5, %p3953_p4 }
  0x10   :  { %p3956_p7 = pnand %p3955_p6, %p3949_p3 }
  0x12   :  { %3959 = shalt.err (!%p3956_p7)
}
  0x13   :  { %s4011_s20 = smov 80   ;;  %s4012_s21 = smov 5  }
  0x14   :  { %21 = dma.hbm_to_vmem [thread:$0]  %s5472_s0, 80, %s16_s10, [#allocation3], %s4011_s20, %s4011_s20, %s4012_s21  }
  0x15   :  { %s4013_s24 = smov [#allocation5]   ;;  %s3960_s28 = scalar_lea.hbm %s5473_s1, 10240 }
  0x16   :  { %s27_s25 = sshll.u32 %s4013_s24, 4  ;;  %p3961_p8 = scmp.ne.s32.totalorder %s5473_s1, %s3960_s28  ;;  %s28_s25 = int_to_ptr.vmem [resolvable:$true] %s27_s25 }
  0x17   :  { %p3964_p9 = scmp.lt.u32.totalorder %s3960_s28, %s5473_s1 }
  0x19   :  { %p3966_p10 = pnand %p3964_p9, %p3961_p8 }
  0x1b   :  { %3969 = shalt.err (!%p3966_p10)
}
  0x1c   :  { %s3970_s5 = scalar_lea.vmem %s28_s25, 10240  ;;  %p3975_p12 = scmp.lt.s32.totalorder %s28_s25, %s28_s25 }
  0x1d   :  { %p3971_p11 = scmp.ne.s32.totalorder %s28_s25, %s3970_s5  ;;  %p3976_p13 = scmp.lt.s32.totalorder %s3970_s5, %s3970_s5 }
  0x1f   :  { %p3977_p0 = por %p3976_p13, %p3975_p12 }
  0x21   :  { %p3978_p1 = pnand %p3977_p0, %p3971_p11 }
  0x23   :  { %3981 = shalt.err (!%p3978_p1)
}
  0x24   :  { %s4014_s0 = smov 128   ;;  %s4015_s6 = smov 8  }
  0x25   :  { %33 = dma.hbm_to_vmem [thread:$0]  %s5473_s1, 10240, %s28_s25, [#allocation6], %s4014_s0, %s4014_s0, %s4015_s6  }
  0x26   :  { %4004 = dma.done.wait [#allocation3], 640  }
  0x27   :  { %4005 = vsyncadd [#allocation3], 4294966656 }
  0x28   :  { %4006 = dma.done.wait [#allocation6], 10240  }
  0x29   :  { %4007 = vsyncadd [#allocation6], 4294957056  ;;  %v4016_v0 = vmov 1966171168   ;;  %v147_v2 = vlaneseq  ;;  %v64_v3 = vld [vmem:[#allocation5 + $0x80] sm:$0xff]  ;;  %v65_v4 = vld [vmem:[#allocation5 + $0x88] sm:$0xff] }
  0x2a   :  { %v145_v1 = vunpack.c.l.s4 %v4016_v0  ;;  %v96_v5 = vld [vmem:[#allocation5 + $0x180] sm:$0xff]  ;;  %v307_v6 = vand.u32 4294901760, %v64_v3  ;;  %v310_v7 = vand.u32 4294901760, %v65_v4  ;;  %v97_v8 = vld [vmem:[#allocation5 + $0x188] sm:$0xff]  ;;  %v66_v17 = vld [vmem:[#allocation5 + $0x90] sm:$0xff]  ;;  %vm4018_vm0 = vmmov 0  }
  0x2b   :  { %v1169_v9 = vand.u32 4294901760, %v96_v5  ;;  %v48_v10 = vld [vmem:[#allocation5] sm:$0xff]  ;;  %v49_v11 = vld [vmem:[#allocation5 + $0x8] sm:$0xff]  ;;  %v1172_v12 = vand.u32 4294901760, %v97_v8  ;;  %v67_v19 = vld [vmem:[#allocation5 + $0x98] sm:$0xff]  ;;  %v148_v23 = vshrl.u32 %v147_v2, 7 }
  0x2c   :  { %v259_v13 = vand.u32 4294901760, %v48_v10  ;;  %v262_v14 = vand.u32 4294901760, %v49_v11  ;;  %v80_v15 = vld [vmem:[#allocation5 + $0x100] sm:$0xff]  ;;  %v81_v16 = vld [vmem:[#allocation5 + $0x108] sm:$0xff]  ;;  %v4062_v18 = vpack.c.bf16 %v310_v7, %v307_v6  ;;  %v98_v20 = vld [vmem:[#allocation5 + $0x190] sm:$0xff]  ;;  %v146_v22 = vunpack.c.0.s8 %v145_v1 }
  0x2d   :  { %v99_v21 = vld [vmem:[#allocation5 + $0x198] sm:$0xff]  ;;  %v4064_v24 = vpack.c.bf16 %v1172_v12, %v1169_v9  ;;  %v4068_v26 = vld [vmem:[#allocation5 + $0x10] sm:$0xff]  ;;  %v1121_v27 = vand.u32 4294901760, %v80_v15  ;;  %v1124_v28 = vand.u32 4294901760, %v81_v16  ;;  %v313_v29 = vand.u32 4294901760, %v66_v17  ;;  %v68_v39 = vld [vmem:[#allocation5 + $0xa0] sm:$0xff] }
  0x2e   :  { %5720 = vst [vmem:[#allocation11_spill] sm:$0xff] %v4062_v18  ;;  %v4066_v25 = vpack.c.bf16 %v262_v14, %v259_v13  ;;  %3375 = vmatprep.subr.bf16.mxu1 %v4062_v18  ;;  %v316_v30 = vand.u32 4294901760, %v67_v19  ;;  %v1175_v31 = vand.u32 4294901760, %v98_v20  ;;  %v1178_v32 = vand.u32 4294901760, %v99_v21  ;;  %v51_v33 = vld [vmem:[#allocation5 + $0x18] sm:$0xff]  ;;  %v4073_v34 = vld [vmem:[#allocation5 + $0x110] sm:$0xff] }
  0x2f   :  { %5721 = vst [vmem:[#allocation12_spill] sm:$0xff] %v4064_v24  ;;  %3567 = vmatprep.subr.bf16.mxu0 %v4064_v24  ;;  %v4075_v35 = vld [vmem:[#allocation5 + $0x118] sm:$0xff]  ;;  %v4077_v36 = vsub.f32 %v64_v3, %v307_v6  ;;  %v4079_v37 = vpack.c.bf16 %v1124_v28, %v1121_v27  ;;  %v265_v38 = vand.u32 4294901760, %v4068_v26  ;;  %v4082_v40 = vld [vmem:[#allocation5 + $0xa8] sm:$0xff]  ;;  %v4084_v41 = vld [vmem:[#allocation5 + $0x1a0] sm:$0xff]  ;;  %v4086_v42 = vsub.s32 %v146_v22, %v148_v23 }
  0x30   :  { %5722 = vst [vmem:[#allocation13_spill] sm:$0xff] %v4066_v25  ;;  %3377 = vmatpush3.bf16.msra.mxu1 %v4066_v25  ;;  %v4088_v43 = vsub.f32 %v65_v4, %v310_v7  ;;  %v4090_v44 = vsub.f32 %v96_v5, %v1169_v9  ;;  %v4092_v45 = vpack.c.bf16 %v316_v30, %v313_v29  ;;  %v4096_v47 = vld [vmem:[#allocation5 + $0x1a8] sm:$0xff]  ;;  %v268_v50 = vand.u32 4294901760, %v51_v33  ;;  %v52_v56 = vld [vmem:[#allocation5 + $0x20] sm:$0xff]  ;;  %v4118_v0 = vld [vmem:[#allocation5 + $0xb0] sm:$0xff] }
  0x31   :  { %5723 = vst [vmem:[#allocation14_spill] sm:$0xff] %v4079_v37  ;;  %5724 = vst [vmem:[#allocation15_spill] sm:$0xff] %v4086_v42  ;;  %v4094_v46 = vpack.c.bf16 %v1178_v32, %v1175_v31  ;;  %v4098_v48 = vsub.f32 %v97_v8, %v1172_v12  ;;  %v4100_v49 = vsub.f32 %v48_v10, %v259_v13  ;;  %3569 = vmatpush3.bf16.msra.mxu0 %v4079_v37  ;;  %v53_v57 = vld [vmem:[#allocation5 + $0x28] sm:$0xff]  ;;  %v84_v62 = vld [vmem:[#allocation5 + $0x120] sm:$0xff] }
  0x32   :  { %5725 = vst [vmem:[#allocation16_spill] sm:$0xff] %v4090_v44  ;;  %5726 = vst [vmem:[#allocation17_spill] sm:$0xff] %v4092_v45  ;;  %v1127_v51 = vand.u32 4294901760, %v4073_v34  ;;  %3379 = vmatprep.subr.bf16.mxu1 %v4092_v45  ;;  %v1130_v52 = vand.u32 4294901760, %v4075_v35  ;;  %v319_v53 = vand.u32 4294901760, %v68_v39  ;;  %v322_v54 = vand.u32 4294901760, %v4082_v40 }
  0x33   :  { %5727 = vst [vmem:[#allocation18_spill] sm:$0xff] %v4094_v46  ;;  %5728 = vst [vmem:[#allocation19_spill] sm:$0xff] %v4098_v48  ;;  %3571 = vmatprep.subr.bf16.mxu0 %v4094_v46  ;;  %v1181_v55 = vand.u32 4294901760, %v4084_v41  ;;  %v4109_v58 = vsub.f32 %v49_v11, %v262_v14  ;;  %v4111_v59 = vsub.f32 %v80_v15, %v1121_v27  ;;  %v1184_v61 = vand.u32 4294901760, %v4096_v47  ;;  %v4116_v63 = vld [vmem:[#allocation5 + $0x128] sm:$0xff]  ;;  %v4128_v5 = vld [vmem:[#allocation5 + $0xb8] sm:$0xff] }
  0x34   :  { %v4113_v60 = vpack.c.bf16 %v268_v50, %v265_v38  ;;  %v4120_v1 = vsub.f32 %v81_v16, %v1124_v28  ;;  %v4122_v2 = vsub.f32 %v66_v17, %v313_v29  ;;  %v4124_v3 = vpack.c.bf16 %v1130_v52, %v1127_v51  ;;  %v4130_v6 = vld [vmem:[#allocation5 + $0x1b0] sm:$0xff]  ;;  %v4132_v7 = vld [vmem:[#allocation5 + $0x1b8] sm:$0xff]  ;;  %v4209_v37 = vld [vmem:[#allocation5 + $0x140] sm:$0xff] }
  0x35   :  { %5729 = vst [vmem:[#allocation20_spill] sm:$0xff] %v4111_v59  ;;  %v4126_v4 = vpack.c.bf16 %v322_v54, %v319_v53  ;;  %v4134_v8 = vsub.f32 %v67_v19, %v316_v30  ;;  %v4136_v9 = vsub.f32 %v98_v20, %v1175_v31  ;;  %v4138_v10 = vsub.f32 %v99_v21, %v1178_v32  ;;  %v4151_v21 = vld [vmem:[#allocation5 + $0x30] sm:$0xff]  ;;  %v4162_v29 = vld [vmem:[#allocation5 + $0x38] sm:$0xff] }
  0x36   :  { %5730 = vst [vmem:[#allocation21_spill] sm:$0xff] %v4113_v60  ;;  %5731 = vst [vmem:[#allocation22_spill] sm:$0xff] %v4120_v1  ;;  %3381 = vmatpush3.bf16.msra.mxu1 %v4113_v60  ;;  %v4141_v11 = vpack.c.bf16 %v1184_v61, %v1181_v55  ;;  %3573 = vmatpush3.bf16.msra.mxu0 %v4124_v3  ;;  %v271_v12 = vand.u32 4294901760, %v52_v56  ;;  %v274_v13 = vand.u32 4294901760, %v53_v57  ;;  %v1133_v14 = vand.u32 4294901760, %v84_v62  ;;  %v4164_v30 = vld [vmem:[#allocation5 + $0x130] sm:$0xff] }
  0x37   :  { %5732 = vst [vmem:[#allocation23_spill] sm:$0xff] %v4124_v3  ;;  %5733 = vst [vmem:[#allocation24_spill] sm:$0xff] %v4126_v4  ;;  %3383 = vmatprep.subr.bf16.mxu1 %v4126_v4  ;;  %v1136_v15 = vand.u32 4294901760, %v4116_v63  ;;  %v325_v16 = vand.u32 4294901760, %v4118_v0  ;;  %v328_v17 = vand.u32 4294901760, %v4128_v5  ;;  %v1187_v19 = vand.u32 4294901760, %v4130_v6 }
  0x38   :  { %5734 = vst [vmem:[#allocation25_spill] sm:$0xff] %v4136_v9  ;;  %5735 = vst [vmem:[#allocation26_spill] sm:$0xff] %v4138_v10  ;;  %3575 = vmatprep.subr.bf16.mxu0 %v4141_v11  ;;  %v4154_v22 = vsub.f32 %v4068_v26, %v265_v38  ;;  %v4156_v23 = vsub.f32 %v51_v33, %v268_v50  ;;  %v4158_v27 = vpack.c.bf16 %v274_v13, %v271_v12  ;;  %v4166_v31 = vld [vmem:[#allocation5 + $0x138] sm:$0xff]  ;;  %v72_v38 = vld [vmem:[#allocation5 + $0xc0] sm:$0xff] }
  0x39   :  { %5736 = vst [vmem:[#allocation27_spill] sm:$0xff] %v4141_v11  ;;  %v4160_v28 = vpack.c.bf16 %v1136_v15, %v1133_v14  ;;  %v4169_v32 = vsub.f32 %v4073_v34, %v1127_v51  ;;  %v4172_v20 = vsub.f32 %v4075_v35, %v1130_v52  ;;  %v4174_v26 = vsub.f32 %v68_v39, %v319_v53  ;;  %v73_v50 = vld [vmem:[#allocation5 + $0xc8] sm:$0xff]  ;;  %v4191_v51 = vld [vmem:[#allocation5 + $0x1c0] sm:$0xff]  ;;  %v4233_v60 = vld [vmem:[#allocation5 + $0x1d0] sm:$0xff] }
  0x3a   :  { %5737 = vst [vmem:[#allocation28_spill] sm:$0xff] %v4154_v22  ;;  %5738 = vst [vmem:[#allocation29_spill] sm:$0xff] %v4156_v23  ;;  %v4176_v33 = vpack.c.bf16 %v328_v17, %v325_v16  ;;  %v4179_v11 = vsub.f32 %v4082_v40, %v322_v54  ;;  %v4182_v3 = vsub.f32 %v4084_v41, %v1181_v55  ;;  %3385 = vmatpush3.bf16.msra.mxu1 %v4158_v27  ;;  %v4200_v54 = vld [vmem:[#allocation5 + $0x1c8] sm:$0xff]  ;;  %v4248_v25 = vld [vmem:[#allocation5 + $0x150] sm:$0xff] }
  0x3b   :  { %5739 = vst [vmem:[#allocation30_spill] sm:$0xff] %v4158_v27  ;;  %5740 = vst [vmem:[#allocation31_spill] sm:$0xff] %v4160_v28  ;;  %3577 = vmatpush3.bf16.msra.mxu0 %v4160_v28  ;;  %v5747_v34 = vand.u32 4294901760, %v4132_v7  ;;  %v277_v39 = vand.u32 4294901760, %v4151_v21  ;;  %v4194_v52 = vsub.f32 %v4096_v47, %v1184_v61  ;;  %v280_v40 = vand.u32 4294901760, %v4162_v29  ;;  %v56_v47 = vld [vmem:[#allocation5 + $0x40] sm:$0xff] }
  0x3c   :  { %5741 = vst [vmem:[#allocation32_spill] sm:$0xff] %v4169_v32  ;;  %5742 = vst [vmem:[#allocation33_spill] sm:$0xff] %v4172_v20  ;;  %3387 = vmatprep.subr.bf16.mxu1 %v4176_v33  ;;  %v1139_v41 = vand.u32 4294901760, %v4164_v30  ;;  %v1142_v53 = vand.u32 4294901760, %v4166_v31  ;;  %v4202_v55 = vsub.f32 %v52_v56, %v271_v12  ;;  %v331_v28 = vand.u32 4294901760, %v72_v38  ;;  %v4207_v61 = vld [vmem:[#allocation5 + $0x48] sm:$0xff] }
  0x3d   :  { %5743 = vst [vmem:[#allocation34_spill] sm:$0xff] %v4174_v26  ;;  %5744 = vst [vmem:[#allocation35_spill] sm:$0xff] %v4176_v33  ;;  %v4188_v35 = vpack.c.bf16 %v5747_v34, %v1187_v19  ;;  %v4204_v34 = vsub.f32 %v53_v57, %v274_v13  ;;  %v334_v46 = vand.u32 4294901760, %v73_v50  ;;  %v4211_v24 = vsub.f32 %v84_v62, %v1133_v14  ;;  %v89_v12 = vld [vmem:[#allocation5 + $0x148] sm:$0xff]  ;;  %v4218_v57 = vld [vmem:[#allocation5 + $0xd0] sm:$0xff] }
  0x3e   :  { %5745 = vst [vmem:[#allocation36_spill] sm:$0xff] %v4179_v11  ;;  %5746 = vst [vmem:[#allocation37_spill] sm:$0xff] %v4182_v3  ;;  %v4213_v33 = vpack.c.bf16 %v280_v40, %v277_v39  ;;  %v4215_v27 = vpack.c.bf16 %v1142_v53, %v1139_v41  ;;  %v1193_v56 = vand.u32 4294901760, %v4191_v51  ;;  %v4220_v13 = vld [vmem:[#allocation5 + $0xd8] sm:$0xff]  ;;  %v4226_v4 = vsub.f32 %v4118_v0, %v325_v16 }
  0x3f   :  { %5748 = vst [vmem:[#allocation38_spill] sm:$0xff] %v4188_v35  ;;  %5749 = vst [vmem:[#allocation39_spill] sm:$0xff] %v4194_v52  ;;  %3579 = vmatprep.subr.bf16.mxu0 %v4188_v35  ;;  %v4223_v35 = vsub.f32 %v4116_v63, %v1136_v15  ;;  %v4229_v62 = vsub.f32 %v4128_v5, %v328_v17  ;;  %v4231_v14 = vpack.c.bf16 %v334_v46, %v331_v28  ;;  %v4242_v16 = vld [vmem:[#allocation5 + $0x1d8] sm:$0xff]  ;;  %v4244_v5 = vld [vmem:[#allocation5 + $0x50] sm:$0xff] }
  0x40   :  { %5750 = vst [vmem:[#allocation40_spill] sm:$0xff] %v4202_v55  ;;  %5751 = vst [vmem:[#allocation41_spill] sm:$0xff] %v4204_v34  ;;  %v4236_v45 = vsub.f32 %v4130_v6, %v1187_v19  ;;  %3389 = vmatpush3.bf16.msra.mxu1 %v4213_v33  ;;  %3581 = vmatpush3.bf16.msra.mxu0 %v4215_v27  ;;  %v1196_v63 = vand.u32 4294901760, %v4200_v54  ;;  %v283_v15 = vand.u32 4294901760, %v56_v47  ;;  %v286_v0 = vand.u32 4294901760, %v4207_v61  ;;  %v4246_v17 = vld [vmem:[#allocation5 + $0x58] sm:$0xff] }
  0x41   :  { %5752 = vst [vmem:[#allocation42_spill] sm:$0xff] %v4211_v24  ;;  %5753 = vst [vmem:[#allocation43_spill] sm:$0xff] %v4213_v33  ;;  %3391 = vmatprep.subr.bf16.mxu1 %v4231_v14  ;;  %v1145_v6 = vand.u32 4294901760, %v4209_v37  ;;  %v1148_v19 = vand.u32 4294901760, %v89_v12  ;;  %v340_v33 = vand.u32 4294901760, %v4220_v13  ;;  %v4254_v18 = vld [vmem:[#allocation5 + $0x158] sm:$0xff]  ;;  %v4271_v52 = vsub.f32 %v4162_v29, %v280_v40 }
  0x42   :  { %5754 = vst [vmem:[#allocation44_spill] sm:$0xff] %v4215_v27  ;;  %5755 = vst [vmem:[#allocation45_spill] sm:$0xff] %v4223_v35  ;;  %v337_v27 = vand.u32 4294901760, %v4218_v57  ;;  %v5760_v35 = vand.u32 4294901760, %v4132_v7  ;;  %v4274_v3 = vsub.f32 %v4164_v30, %v1139_v41  ;;  %v4277_v34 = vsub.f32 %v4166_v31, %v1142_v53  ;;  %v108_v53 = vld [vmem:[#allocation5 + $0x1e0] sm:$0xff] }
  0x43   :  { %5756 = vst [vmem:[#allocation46_spill] sm:$0xff] %v4226_v4  ;;  %5757 = vst [vmem:[#allocation47_spill] sm:$0xff] %v4229_v62  ;;  %v4264_v62 = vsub.f32 %v4151_v21, %v277_v39  ;;  %v4268_v4 = vpack.c.bf16 %v286_v0, %v283_v15  ;;  %v4279_v55 = vpack.c.bf16 %v1148_v19, %v1145_v6  ;;  %v1199_v30 = vand.u32 4294901760, %v4233_v60 }
  0x44   :  { %5758 = vst [vmem:[#allocation48_spill] sm:$0xff] %v4231_v14  ;;  %5759 = vst [vmem:[#allocation49_spill] sm:$0xff] %v4236_v45  ;;  %v4256_v45 = vld [vmem:[#allocation5 + $0xe0] sm:$0xff]  ;;  %v4261_v24 = vsub.f32 %v4132_v7, %v5760_v35  ;;  %v4266_v14 = vpack.c.bf16 %v1196_v63, %v1193_v56  ;;  %v4281_v7 = vld [vmem:[#allocation5 + $0xe8] sm:$0xff]  ;;  %v4283_v35 = vsub.f32 %v72_v38, %v331_v28  ;;  %v1202_v31 = vand.u32 4294901760, %v4242_v16 }
  0x45   :  { %5762 = vst [vmem:[#allocation51_spill] sm:$0xff] %v4264_v62  ;;  %5764 = vst [vmem:[#allocation53_spill] sm:$0xff] %v4268_v4  ;;  %v4285_v21 = vsub.f32 %v73_v50, %v334_v46  ;;  %3393 = vmatpush3.bf16.msra.mxu1 %v4268_v4  ;;  %v4289_v29 = vpack.c.bf16 %v340_v33, %v337_v27  ;;  %v289_v39 = vand.u32 4294901760, %v4244_v5  ;;  %v292_v40 = vand.u32 4294901760, %v4246_v17 }
  0x46   :  { %5761 = vst [vmem:[#allocation50_spill] sm:$0xff] %v4261_v24  ;;  %5763 = vst [vmem:[#allocation52_spill] sm:$0xff] %v4266_v14  ;;  %3583 = vmatprep.subr.bf16.mxu0 %v4266_v14  ;;  %v1151_v28 = vand.u32 4294901760, %v4248_v25  ;;  %v4298_v46 = vsub.f32 %v4191_v51, %v1193_v56  ;;  %v1154_v38 = vand.u32 4294901760, %v4254_v18  ;;  %v343_v50 = vand.u32 4294901760, %v4256_v45  ;;  %v60_v51 = vld [vmem:[#allocation5 + $0x60] sm:$0xff] }
  0x47   :  { %5765 = vst [vmem:[#allocation54_spill] sm:$0xff] %v4271_v52  ;;  %5766 = vst [vmem:[#allocation55_spill] sm:$0xff] %v4274_v3  ;;  %3585 = vmatpush3.bf16.msra.mxu0 %v4279_v55  ;;  %3395 = vmatprep.subr.bf16.mxu1 %v4289_v29  ;;  %v346_v41 = vand.u32 4294901760, %v4281_v7  ;;  %v4305_v14 = vsub.f32 %v4200_v54, %v1196_v63  ;;  %v4307_v4 = vsub.f32 %v56_v47, %v283_v15  ;;  %v61_v56 = vld [vmem:[#allocation5 + $0x68] sm:$0xff]  ;;  %v78_v47 = vld [vmem:[#allocation5 + $0xf0] sm:$0xff] }
  0x48   :  { %5767 = vst [vmem:[#allocation56_spill] sm:$0xff] %v4277_v34  ;;  %5768 = vst [vmem:[#allocation57_spill] sm:$0xff] %v4279_v55  ;;  %v109_v55 = vld [vmem:[#allocation5 + $0x1e8] sm:$0xff]  ;;  %v4309_v34 = vpack.c.bf16 %v1202_v31, %v1199_v30  ;;  %v4311_v3 = vpack.c.bf16 %v292_v40, %v289_v39  ;;  %v4319_v24 = vsub.f32 %v89_v12, %v1148_v19  ;;  %v79_v63 = vld [vmem:[#allocation5 + $0xf8] sm:$0xff] }
  0x49   :  { %5769 = vst [vmem:[#allocation58_spill] sm:$0xff] %v4283_v35  ;;  %5770 = vst [vmem:[#allocation59_spill] sm:$0xff] %v4285_v21  ;;  %v4317_v21 = vsub.f32 %v4209_v37, %v1145_v6  ;;  %v4321_v35 = vpack.c.bf16 %v1154_v38, %v1151_v28  ;;  %v93_v54 = vld [vmem:[#allocation5 + $0x168] sm:$0xff]  ;;  %v4324_v15 = vsub.f32 %v4218_v57, %v337_v27  ;;  %v1205_v37 = vand.u32 4294901760, %v108_v53 }
  0x4a   :  { %5771 = vst [vmem:[#allocation60_spill] sm:$0xff] %v4289_v29  ;;  %5772 = vst [vmem:[#allocation61_spill] sm:$0xff] %v4298_v46  ;;  %v92_v29 = vld [vmem:[#allocation5 + $0x160] sm:$0xff]  ;;  %v4314_v46 = vsub.f32 %v4207_v61, %v286_v0  ;;  %3587 = vmatprep.subr.bf16.mxu0 %v4309_v34  ;;  %3397 = vmatpush3.bf16.msra.mxu1 %v4311_v3  ;;  %v4331_v61 = vpack.c.bf16 %v346_v41, %v343_v50  ;;  %v1208_v12 = vand.u32 4294901760, %v109_v55 }
  0x4b   :  { %5773 = vst [vmem:[#allocation62_spill] sm:$0xff] %v4305_v14  ;;  %5774 = vst [vmem:[#allocation63_spill] sm:$0xff] %v4307_v4  ;;  %v4327_v14 = vsub.f32 %v4220_v13, %v340_v33  ;;  %3589 = vmatpush3.bf16.msra.mxu0 %v4321_v35  ;;  %v295_v0 = vand.u32 4294901760, %v60_v51  ;;  %v298_v6 = vand.u32 4294901760, %v61_v56  ;;  %v1157_v19 = vand.u32 4294901760, %v92_v29  ;;  %v110_v13 = vld [vmem:[#allocation5 + $0x1f0] sm:$0xff] }
  0x4c   :  { %5775 = vst [vmem:[#allocation64_spill] sm:$0xff] %v4309_v34  ;;  %5776 = vst [vmem:[#allocation65_spill] sm:$0xff] %v4311_v3  ;;  %3399 = vmatprep.subr.bf16.mxu1 %v4331_v61  ;;  %v1160_v27 = vand.u32 4294901760, %v93_v54  ;;  %v349_v33 = vand.u32 4294901760, %v78_v47  ;;  %v352_v57 = vand.u32 4294901760, %v79_v63  ;;  %v111_v34 = vld [vmem:[#allocation5 + $0x1f8] sm:$0xff]  ;;  %v4339_v3 = vsub.f32 %v4242_v16, %v1202_v31 }
  0x4d   :  { %5777 = vst [vmem:[#allocation66_spill] sm:$0xff] %v4314_v46  ;;  %5778 = vst [vmem:[#allocation67_spill] sm:$0xff] %v4317_v21  ;;  %v4342_v21 = vsub.f32 %v4244_v5, %v289_v39  ;;  %v4361_v16 = vsub.f32 %v4254_v18, %v1154_v38  ;;  %v4365_v31 = vld [vmem:[#allocation5 + $0x178] sm:$0xff]  ;;  %v3929_v18 = vld [vmem:[#allocation2 + $0xa] ss:$5 sps:$4 sm:$0xff]  }
  0x4e   :  { %5779 = vst [vmem:[#allocation68_spill] sm:$0xff] %v4319_v24  ;;  %5780 = vst [vmem:[#allocation69_spill] sm:$0xff] %v4321_v35  ;;  %v4335_v24 = vsub.f32 %v4233_v60, %v1199_v30  ;;  %v4344_v35 = vpack.c.bf16 %v1208_v12, %v1205_v37  ;;  %v4350_v60 = vld [vmem:[#allocation5 + $0x78] sm:$0xff]  ;;  %v4352_v30 = vld [vmem:[#allocation5 + $0x170] sm:$0xff]  ;;  %v4363_v5 = vpack.c.bf16 %v1160_v27, %v1157_v19 }
  0x4f   :  { %5781 = vst [vmem:[#allocation70_spill] sm:$0xff] %v4324_v15  ;;  %5782 = vst [vmem:[#allocation71_spill] sm:$0xff] %v4327_v14  ;;  %v4346_v14 = vpack.c.bf16 %v298_v6, %v295_v0  ;;  %v4348_v15 = vld [vmem:[#allocation5 + $0x70] sm:$0xff]  ;;  %v3926_v39 = vld [vmem:[#allocation2] ss:$5 sps:$4 sm:$0xff]   ;;  %v304_v38 = vand.u32 4294901760, %v4350_v60 }
  0x50   :  { %5783 = vst [vmem:[#allocation72_spill] sm:$0xff] %v4331_v61  ;;  %5784 = vst [vmem:[#allocation73_spill] sm:$0xff] %v4335_v24  ;;  %v4355_v61 = vsub.f32 %v4246_v17, %v292_v40  ;;  %v4358_v24 = vsub.f32 %v4248_v25, %v1151_v28  ;;  %3591 = vmatprep.subr.bf16.mxu0 %v4344_v35  ;;  %v4375_v25 = vpack.c.bf16 %v352_v57, %v349_v33 }
  0x51   :  { %5785 = vst [vmem:[#allocation74_spill] sm:$0xff] %v4339_v3  ;;  %5786 = vst [vmem:[#allocation75_spill] sm:$0xff] %v4342_v21  ;;  %v4368_v3 = vsub.f32 %v4256_v45, %v343_v50  ;;  %v4371_v21 = vsub.f32 %v4281_v7, %v346_v41  ;;  %3401 = vmatpush3.bf16.msra.mxu1 %v4346_v14  ;;  %v1211_v17 = vand.u32 4294901760, %v110_v13  ;;  %3593 = vmatpush3.bf16.msra.mxu0 %v4363_v5  ;;  %v3932_v50 = vld [vmem:[#allocation2 + $0x14] ss:$5 sps:$4 sm:$0xff]  }
  0x52   :  { %5787 = vst [vmem:[#allocation76_spill] sm:$0xff] %v4344_v35  ;;  %5788 = vst [vmem:[#allocation77_spill] sm:$0xff] %v4346_v14  ;;  %v1214_v40 = vand.u32 4294901760, %v111_v34  ;;  %v301_v28 = vand.u32 4294901760, %v4348_v15  ;;  %v4381_v7 = vsub.f32 %v108_v53, %v1205_v37  ;;  %v4383_v41 = vsub.f32 %v109_v55, %v1208_v12  ;;  %3403 = vmatprep.subr.bf16.mxu1 %v4375_v25 }
  0x53   :  { %5789 = vst [vmem:[#allocation78_spill] sm:$0xff] %v4355_v61  ;;  %5790 = vst [vmem:[#allocation79_spill] sm:$0xff] %v4358_v24  ;;  %v4385_v35 = vsub.f32 %v60_v51, %v295_v0  ;;  %v5560_v14 = vand.u32 4294901760, %v4365_v31  ;;  %v150_v45 = vrot.slane %v3926_v39, %v4086_v42  ;;  %v4398_v53 = vsub.f32 %v93_v54, %v1160_v27 }
  0x54   :  { %5791 = vst [vmem:[#allocation80_spill] sm:$0xff] %v4361_v16  ;;  %5792 = vst [vmem:[#allocation81_spill] sm:$0xff] %v4363_v5  ;;  %v3935_v16 = vld [vmem:[#allocation2 + $0x1e] ss:$5 sps:$4 sm:$0xff]   ;;  %v4389_v5 = vsub.f32 %v61_v56, %v298_v6  ;;  %v4391_v24 = vpack.c.bf16 %v1214_v40, %v1211_v17  ;;  %v4400_v55 = vsub.f32 %v78_v47, %v349_v33  ;;  %v5803_v51 = vand.u32 4294901760, %v4352_v30 }
  0x55   :  { %5793 = vst [vmem:[#allocation82_spill] sm:$0xff] %v4368_v3  ;;  %5794 = vst [vmem:[#allocation83_spill] sm:$0xff] %v4371_v21  ;;  %v4393_v21 = vpack.c.bf16 %v304_v38, %v301_v28  ;;  %v4396_v3 = vsub.f32 %v92_v29, %v1157_v19  ;;  %v4408_v56 = vsub.f32 %v79_v63, %v352_v57  ;;  %v5559_v54 = vand.u32 4294901760, %v4077_v36 }
  0x56   :  { %5795 = vst [vmem:[#allocation84_spill] sm:$0xff] %v4375_v25  ;;  %5796 = vst [vmem:[#allocation85_spill] sm:$0xff] %v4381_v7  ;;  %v4406_v37 = vpack.c.bf16 %v5560_v14, %v5803_v51  ;;  %3595 = vmatprep.subr.bf16.mxu0 %v4391_v24  ;;  %v164_v12 = vrot.slane %v3929_v18, %v4086_v42  ;;  %v178_v29 = vrot.slane %v3932_v50, %v4086_v42 }
  0x57   :  { %5797 = vst [vmem:[#allocation86_spill] sm:$0xff] %v4383_v41  ;;  %5798 = vst [vmem:[#allocation87_spill] sm:$0xff] %v4389_v5  ;;  %3405 = vmatpush3.bf16.msra.mxu1 %v4393_v21  ;;  %v4415_v47 = vsub.f32 %v110_v13, %v1211_v17  ;;  %v4417_v0 = vsub.f32 %v111_v34, %v1214_v40  ;;  %v192_v6 = vrot.slane %v3935_v16, %v4086_v42 }
  0x58   :  { %5799 = vst [vmem:[#allocation88_spill] sm:$0xff] %v4391_v24  ;;  %5800 = vst [vmem:[#allocation89_spill] sm:$0xff] %v4393_v21  ;;  %3597 = vmatpush3.bf16.msra.mxu0 %v4406_v37  ;;  %v5558_v63 = vand.u32 4294901760, %v4088_v43  ;;  %v201_v19 = vcombine.high %v150_v45, %v164_v12  ;;  %v200_v27 = vcombine.low %v150_v45, %v164_v12  ;;  %v5561_v17 = vand.u32 4294901760, %v4100_v49 }
  0x59   :  { %5801 = vst [vmem:[#allocation90_spill] sm:$0xff] %v4396_v3  ;;  %5802 = vst [vmem:[#allocation91_spill] sm:$0xff] %v4398_v53  ;;  %v486_v33 = vsub.f32 %v4077_v36, %v5559_v54  ;;  %v3630_v57 = vpack.c.bf16 %v4098_v48, %v4090_v44  ;;  %v204_v39 = vcombine.high %v178_v29, %v192_v6  ;;  %v5562_v45 = vand.u32 4294901760, %v4109_v58 }
  0x5a   :  { %5804 = vst [vmem:[#allocation92_spill] sm:$0xff] %v4406_v37  ;;  %v203_v13 = vcombine.low %v178_v29, %v192_v6  ;;  %v493_v34 = vsub.f32 %v4088_v43, %v5558_v63  ;;  %v226_v16 = vrot.slane %v201_v19, %v4086_v42  ;;  %v212_v18 = vrot.slane %v200_v27, %v4086_v42 }
  0x5b   :  { %v487_v40 = vand.u32 4294901760, %v486_v33  ;;  %3631 = vmatprep.subr.bf16.mxu0 %v3630_v57  ;;  %v247_v50 = vrot.slane %v204_v39, %v4086_v42  ;;  %v374_v29 = vsub.f32 %v4100_v49, %v5561_v17  ;;  %v4440_v6 = vsub.f32 %v4348_v15, %v301_v28 }
  0x5c   :  { %v233_v51 = vrot.slane %v203_v13, %v4086_v42  ;;  %v494_v12 = vand.u32 4294901760, %v493_v34  ;;  %v381_v19 = vsub.f32 %v4109_v58, %v5562_v45  ;;  %v5566_v27 = vand.u32 4294901760, %v4122_v2 }
  0x5d   :  { %v5565_v33 = vand.u32 4294901760, %v4134_v8  ;;  %v251_v57 = vcombine.low %v226_v16, %v247_v50  ;;  %v252_v13 = vcombine.high %v226_v16, %v247_v50  ;;  %v375_v34 = vand.u32 4294901760, %v374_v29 }
  0x5e   :  { %v248_v39 = vcombine.low %v212_v18, %v233_v51  ;;  %v3406_v63 = vpack.c.bf16 %v494_v12, %v487_v40  ;;  %v382_v54 = vand.u32 4294901760, %v381_v19  ;;  %v249_v14 = vcombine.high %v212_v18, %v233_v51 }
  0x5f   :  { %v500_v15 = vsub.f32 %v4122_v2, %v5566_v27  ;;  %v4450_v28 = vand.u32 4294901760, %v251_v57  ;;  %v4454_v45 = vand.u32 4294901760, %v252_v13  ;;  %v507_v37 = vsub.f32 %v4134_v8, %v5565_v33 }
  0x60   :  { %v4452_v17 = vand.u32 4294901760, %v248_v39  ;;  %3407 = vmatprep.subr.bf16.mxu1 %v3406_v63  ;;  %v4460_v16 = vsub.f32 %v4350_v60, %v304_v38  ;;  %v3408_v40 = vpack.c.bf16 %v382_v54, %v375_v34  ;;  %v4462_v18 = vand.u32 4294901760, %v249_v14 }
  0x61   :  { %5805 = vst [vmem:[#allocation93_spill] sm:$0xff] %v4450_v28  ;;  %5807 = vst [vmem:[#allocation95_spill] sm:$0xff] %v4454_v45  ;;  %v3632_v50 = vpack.c.bf16 %v4120_v1, %v4111_v59  ;;  %v4467_v51 = vsub.f32 %v251_v57, %v4450_v28  ;;  %v4473_v12 = vsub.f32 %v252_v13, %v4454_v45  ;;  %v501_v29 = vand.u32 4294901760, %v500_v15 }
  0x62   :  { %5806 = vst [vmem:[#allocation94_spill] sm:$0xff] %v4452_v17  ;;  %5808 = vst [vmem:[#allocation96_spill] sm:$0xff] %v4462_v18  ;;  %v4470_v63 = vsub.f32 %v248_v39, %v4452_v17  ;;  %v4476_v19 = vsub.f32 %v249_v14, %v4462_v18  ;;  %v3634_v60 = vpack.c.bf16 %v4138_v10, %v4136_v9  ;;  %v5569_v38 = vand.u32 4294901760, %v4154_v22 }
  0x63   :  { %5809 = vst [vmem:[#allocation97_spill] sm:$0xff] %v4467_v51  ;;  %5811 = vst [vmem:[#allocation99_spill] sm:$0xff] %v4473_v12  ;;  %v5572_v54 = vand.u32 4294901760, %v4156_v23  ;;  %v5577_v57 = vand.u32 4294901760, %v4467_v51  ;;  %v5585_v39 = vand.u32 4294901760, %v4473_v12  ;;  %v508_v33 = vand.u32 4294901760, %v507_v37 }
  0x64   :  { %5810 = vst [vmem:[#allocation98_spill] sm:$0xff] %v4470_v63  ;;  %5812 = vst [vmem:[#allocation100_spill] sm:$0xff] %v4476_v19  ;;  %v5584_v34 = vand.u32 4294901760, %v4470_v63  ;;  %v388_v14 = vsub.f32 %v4154_v22, %v5569_v38  ;;  %v5596_v38 = vand.u32 4294901760, %v4179_v11  ;;  %v5813_v21 = vand.u32 4294901760, %v4476_v19 }
  0x65   :  { %v395_v15 = vsub.f32 %v4156_v23, %v5572_v54  ;;  %v357_v24 = vsub.f32 %v4467_v51, %v5577_v57  ;;  %v1219_v13 = vsub.f32 %v4473_v12, %v5585_v39  ;;  %v5814_v18 = vand.u32 4294901760, %v4174_v26 }
  0x66   :  { %v363_v37 = vsub.f32 %v4470_v63, %v5584_v34  ;;  %v1225_v54 = vsub.f32 %v4476_v19, %v5813_v21  ;;  %v389_v25 = vand.u32 4294901760, %v388_v14  ;;  %v521_v34 = vsub.f32 %v4179_v11, %v5596_v38  ;;  %v5819_v38 = vld [vmem:[#allocation46_spill] sm:$0xff] }
  0x67   :  { %v396_v27 = vand.u32 4294901760, %v395_v15  ;;  %v514_v57 = vsub.f32 %v4174_v26, %v5814_v18  ;;  %v358_v42 = vand.u32 4294901760, %v357_v24  ;;  %v1220_v51 = vand.u32 4294901760, %v1219_v13  ;;  %v5815_v15 = vld [vmem:[#allocation40_spill] sm:$0xff]  ;;  %v5816_v18 = vld [vmem:[#allocation41_spill] sm:$0xff] }
  0x68   :  { %v364_v45 = vand.u32 4294901760, %v363_v37  ;;  %v1226_v39 = vand.u32 4294901760, %v1225_v54  ;;  %v3410_v63 = vpack.c.bf16 %v508_v33, %v501_v29  ;;  %v3636_v23 = vpack.c.bf16 %v4172_v20, %v4169_v32  ;;  %v5817_v13 = vld [vmem:[#allocation37_spill] sm:$0xff]  ;;  %v5818_v37 = vld [vmem:[#allocation39_spill] sm:$0xff] }
  0x69   :  { %v515_v22 = vand.u32 4294901760, %v514_v57  ;;  %359 = vmatprep.mubr.f32.mxu1 %v358_v42  ;;  %1221 = vmatprep.mubr.f32.mxu0 %v1220_v51  ;;  %v3412_v21 = vpack.c.bf16 %v396_v27, %v389_v25  ;;  %v522_v14 = vand.u32 4294901760, %v521_v34  ;;  %v5602_v19 = vand.u32 4294901760, %v5815_v15  ;;  %v5820_v33 = vld [vmem:[#allocation47_spill] sm:$0xff] }
  0x6a   :  { %v5599_v24 = vand.u32 4294901760, %v5816_v18  ;;  %365 = vmatmul.mubr.f32.vlgmr.msra.gmra.mrb[0].mxu1 %v364_v45  ;;  %1227 = vmatmul.mubr.f32.vlgmr.msra.gmra.mrb[0].mxu0 %v1226_v39  ;;  %v3638_v26 = vpack.c.bf16 %v5818_v37, %v5817_v13  ;;  %v5601_v54 = vand.u32 4294901760, %v5819_v38  ;;  %v5600_v29 = vand.u32 4294901760, %v5820_v33 }
  0x6b   :  { %v5603_v11 = vand.u32 4294901760, %v4264_v62  ;;  %3409 = vmatpush3.bf16.msra.mxu1 %v3408_v40  ;;  %3633 = vmatpush3.bf16.msra.mxu0 %v3632_v50  ;;  %v3414_v42 = vpack.c.bf16 %v522_v14, %v515_v22  ;;  %v402_v25 = vsub.f32 %v5815_v15, %v5602_v19  ;;  %v5609_v27 = vand.u32 4294901760, %v4271_v52  ;;  %v5821_v50 = vld [vmem:[#allocation58_spill] sm:$0xff] }
  0x6c   :  { %v409_v45 = vsub.f32 %v5816_v18, %v5599_v24  ;;  %3411 = vmatprep.subr.bf16.mxu1 %v3410_v63  ;;  %3635 = vmatprep.subr.bf16.mxu0 %v3634_v60  ;;  %v528_v51 = vsub.f32 %v5819_v38, %v5601_v54  ;;  %v535_v22 = vsub.f32 %v5820_v33, %v5600_v29  ;;  %v5615_v57 = vand.u32 4294901760, %v5821_v50  ;;  %v5822_v14 = vld [vmem:[#allocation42_spill] sm:$0xff]  ;;  %v5823_v24 = vld [vmem:[#allocation45_spill] sm:$0xff]  ;;  %v5826_v18 = vld [vmem:[#allocation59_spill] sm:$0xff] }
  0x6d   :  { %v416_v40 = vsub.f32 %v4264_v62, %v5603_v11  ;;  %v403_v34 = vand.u32 4294901760, %v402_v25  ;;  %v3640_v63 = vpack.c.bf16 %v5823_v24, %v5822_v14  ;;  %v423_v60 = vsub.f32 %v4271_v52, %v5609_v27  ;;  %595 = vmatprep.mubr.f32.mxu1 %v4450_v28  ;;  %1594 = vmatprep.mubr.f32.mxu0 %v4473_v12  ;;  %v5825_v62 = vld [vmem:[#allocation50_spill] sm:$0xff]  ;;  %v5827_v12 = vld [vmem:[#allocation55_spill] sm:$0xff] }
  0x6e   :  { %v410_v39 = vand.u32 4294901760, %v409_v45  ;;  %v529_v29 = vand.u32 4294901760, %v528_v51  ;;  %v536_v54 = vand.u32 4294901760, %v535_v22  ;;  %v542_v11 = vsub.f32 %v5821_v50, %v5615_v57  ;;  %v5824_v45 = vld [vmem:[#allocation49_spill] sm:$0xff]  ;;  %v5828_v51 = vld [vmem:[#allocation56_spill] sm:$0xff] }
  0x6f   :  { %v417_v19 = vand.u32 4294901760, %v416_v40  ;;  %3413 = vmatpush3.bf16.msra.mxu1 %v3412_v21  ;;  %3637 = vmatpush3.bf16.msra.mxu0 %v3636_v23  ;;  %v3642_v33 = vpack.c.bf16 %v5825_v62, %v5824_v45  ;;  %v424_v38 = vand.u32 4294901760, %v423_v60  ;;  %v5617_v27 = vand.u32 4294901760, %v5826_v18  ;;  %v5829_v21 = vld [vmem:[#allocation61_spill] sm:$0xff]  ;;  %v5831_v60 = vld [vmem:[#allocation70_spill] sm:$0xff] }
  0x70   :  { %v3416_v25 = vpack.c.bf16 %v410_v39, %v403_v34  ;;  %3415 = vmatprep.subr.bf16.mxu1 %v3414_v42  ;;  %3639 = vmatprep.subr.bf16.mxu0 %v3638_v26  ;;  %v3418_v28 = vpack.c.bf16 %v536_v54, %v529_v29  ;;  %v3644_v22 = vpack.c.bf16 %v5828_v51, %v5827_v12  ;;  %v5619_v40 = vand.u32 4294901760, %v4307_v4  ;;  %v5830_v34 = vld [vmem:[#allocation62_spill] sm:$0xff]  ;;  %v5832_v29 = vld [vmem:[#allocation71_spill] sm:$0xff] }
  0x71   :  { %v5622_v52 = vand.u32 4294901760, %v4314_v46  ;;  %v543_v57 = vand.u32 4294901760, %v542_v11  ;;  %v549_v23 = vsub.f32 %v5826_v18, %v5617_v27  ;;  %v3646_v39 = vpack.c.bf16 %v5830_v34, %v5829_v21  ;;  %v5833_v18 = vld [vmem:[#allocation75_spill] sm:$0xff]  ;;  %v5835_v21 = vld [vmem:[#allocation68_spill] sm:$0xff] }
  0x72   :  { %v5623_v50 = vand.u32 4294901760, %v5831_v60  ;;  %v3420_v42 = vpack.c.bf16 %v424_v38, %v417_v19  ;;  %v430_v26 = vsub.f32 %v4307_v4, %v5619_v40  ;;  %v5627_v11 = vand.u32 4294901760, %v5832_v29  ;;  %v5834_v4 = vld [vmem:[#allocation67_spill] sm:$0xff] }
  0x73   :  { %v437_v54 = vsub.f32 %v4314_v46, %v5622_v52  ;;  %3417 = vmatpush3.bf16.msra.mxu1 %v3416_v25  ;;  %3641 = vmatpush3.bf16.msra.mxu0 %v3640_v63  ;;  %v550_v51 = vand.u32 4294901760, %v549_v23  ;;  %v5628_v34 = vand.u32 4294901760, %v5833_v18  ;;  %v5629_v19 = vand.u32 4294901760, %v4355_v61  ;;  %v5838_v46 = vld [vmem:[#allocation82_spill] sm:$0xff] }
  0x74   :  { %v556_v27 = vsub.f32 %v5831_v60, %v5623_v50  ;;  %3419 = vmatprep.subr.bf16.mxu1 %v3418_v28  ;;  %3643 = vmatprep.subr.bf16.mxu0 %v3642_v33  ;;  %v431_v38 = vand.u32 4294901760, %v430_v26  ;;  %v3648_v52 = vpack.c.bf16 %v5835_v21, %v5834_v4  ;;  %v563_v63 = vsub.f32 %v5832_v29, %v5627_v11  ;;  %v5836_v26 = vld [vmem:[#allocation73_spill] sm:$0xff]  ;;  %v5839_v4 = vld [vmem:[#allocation83_spill] sm:$0xff] }
  0x75   :  { %v438_v40 = vand.u32 4294901760, %v437_v54  ;;  %v3422_v25 = vpack.c.bf16 %v550_v51, %v543_v57  ;;  %v444_v50 = vsub.f32 %v5833_v18, %v5628_v34  ;;  %v451_v28 = vsub.f32 %v4355_v61, %v5629_v19  ;;  %v5837_v54 = vld [vmem:[#allocation74_spill] sm:$0xff] }
  0x76   :  { %v557_v23 = vand.u32 4294901760, %v556_v27  ;;  %v564_v33 = vand.u32 4294901760, %v563_v63  ;;  %v3650_v60 = vpack.c.bf16 %v5837_v54, %v5836_v26  ;;  %v5633_v21 = vand.u32 4294901760, %v5838_v46 }
  0x77   :  { %v5632_v12 = vand.u32 4294901760, %v5839_v4  ;;  %3421 = vmatpush3.bf16.msra.mxu1 %v3420_v42  ;;  %3645 = vmatpush3.bf16.msra.mxu0 %v3644_v22  ;;  %v3424_v57 = vpack.c.bf16 %v438_v40, %v431_v38  ;;  %v445_v27 = vand.u32 4294901760, %v444_v50  ;;  %v452_v51 = vand.u32 4294901760, %v451_v28  ;;  %v5840_v42 = vld [vmem:[#allocation79_spill] sm:$0xff]  ;;  %v5841_v22 = vld [vmem:[#allocation80_spill] sm:$0xff] }
  0x78   :  { %v5635_v11 = vand.u32 4294901760, %v4385_v35  ;;  %3423 = vmatprep.subr.bf16.mxu1 %v3422_v25  ;;  %3647 = vmatprep.subr.bf16.mxu0 %v3646_v39  ;;  %v3426_v34 = vpack.c.bf16 %v564_v33, %v557_v23  ;;  %v570_v63 = vsub.f32 %v5838_v46, %v5633_v21  ;;  %v5636_v61 = vand.u32 4294901760, %v4389_v5 }
  0x79   :  { %v577_v19 = vsub.f32 %v5839_v4, %v5632_v12  ;;  %v3652_v40 = vpack.c.bf16 %v5841_v22, %v5840_v42  ;;  %v3654_v50 = vpack.c.bf16 %v4383_v41, %v4381_v7  ;;  %v5648_v38 = vand.u32 4294901760, %v4400_v55 }
  0x7a   :  { %v458_v39 = vsub.f32 %v4385_v35, %v5635_v11  ;;  %v571_v25 = vand.u32 4294901760, %v570_v63  ;;  %v465_v28 = vsub.f32 %v4389_v5, %v5636_v61  ;;  %v5647_v33 = vand.u32 4294901760, %v4408_v56 }
  0x7b   :  { %v578_v23 = vand.u32 4294901760, %v577_v19  ;;  %3425 = vmatpush3.bf16.msra.mxu1 %v3424_v57  ;;  %3649 = vmatpush3.bf16.msra.mxu0 %v3648_v52  ;;  %v3428_v12 = vpack.c.bf16 %v452_v51, %v445_v27  ;;  %v584_v4 = vsub.f32 %v4400_v55, %v5648_v38  ;;  %v5646_v11 = vand.u32 4294901760, %v4440_v6 }
  0x7c   :  { %v459_v21 = vand.u32 4294901760, %v458_v39  ;;  %3427 = vmatprep.subr.bf16.mxu1 %v3426_v34  ;;  %3651 = vmatprep.subr.bf16.mxu0 %v3650_v60  ;;  %v466_v19 = vand.u32 4294901760, %v465_v28  ;;  %v591_v61 = vsub.f32 %v4408_v56, %v5647_v33  ;;  %v5645_v5 = vand.u32 4294901760, %v4460_v16 }
  0x7d   :  { %v3430_v63 = vpack.c.bf16 %v578_v23, %v571_v25  ;;  %v585_v57 = vand.u32 4294901760, %v584_v4  ;;  %v472_v52 = vsub.f32 %v4440_v6, %v5646_v11  ;;  %v5842_v27 = vand.u32 4294901760, %v4352_v30  ;;  %v5848_v11 = vld [vmem:[#allocation36_spill] sm:$0xff] }
  0x7e   :  { %v5843_v34 = vand.u32 4294901760, %v4365_v31  ;;  %v592_v39 = vand.u32 4294901760, %v591_v61  ;;  %v479_v25 = vsub.f32 %v4460_v16, %v5645_v5  ;;  %v3432_v4 = vpack.c.bf16 %v466_v19, %v459_v21  ;;  %v5847_v5 = vld [vmem:[#allocation34_spill] sm:$0xff] }
  0x7f   :  { %v4622_v51 = vsub.f32 %v4352_v30, %v5842_v27  ;;  %3429 = vmatpush3.bf16.msra.mxu1 %v3428_v12  ;;  %3653 = vmatpush3.bf16.msra.mxu0 %v3652_v40  ;;  %v3656_v23 = vpack.c.bf16 %v4398_v53, %v4396_v3  ;;  %v3658_v30 = vpack.c.bf16 %v4417_v0, %v4415_v47  ;;  %v473_v28 = vand.u32 4294901760, %v472_v52 }
  0x80   :  { %v4627_v60 = vsub.f32 %v4365_v31, %v5843_v34  ;;  %3431 = vmatprep.subr.bf16.mxu1 %v3430_v63  ;;  %3655 = vmatprep.subr.bf16.mxu0 %v3654_v50  ;;  %v3434_v27 = vpack.c.bf16 %v592_v39, %v585_v57  ;;  %v480_v31 = vand.u32 4294901760, %v479_v25  ;;  %v5644_v61 = vand.u32 4294901760, %v4090_v44  ;;  %v5874_v44 = vld [vmem:[#allocation66_spill] sm:$0xff] }
  0x81   :  { %v5641_v34 = vand.u32 4294901760, %v4098_v48  ;;  %v5640_v40 = vand.u32 4294901760, %v4111_v59  ;;  %v5639_v19 = vand.u32 4294901760, %v4120_v1  ;;  %v3438_v50 = vpack.c.bf16 %v4088_v43, %v4077_v36  ;;  %v5865_v59 = vld [vmem:[#allocation51_spill] sm:$0xff] }
  0x82   :  { %v3436_v12 = vpack.c.bf16 %v480_v31, %v473_v28  ;;  %v3660_v21 = vpack.c.bf16 %v4627_v60, %v4622_v51  ;;  %v5643_v57 = vand.u32 4294901760, %v4136_v9  ;;  %v5642_v52 = vand.u32 4294901760, %v4138_v10  ;;  %v5861_v10 = vld [vmem:[#allocation61_spill] sm:$0xff]  ;;  %v5870_v9 = vld [vmem:[#allocation59_spill] sm:$0xff] }
  0x83   :  { %3433 = vmatpush3.bf16.msra.mxu1 %v3432_v4  ;;  %3657 = vmatpush3.bf16.msra.mxu0 %v3656_v23  ;;  %v3694_v63 = vpack.c.bf16 %v5641_v34, %v5644_v61  ;;  %v3440_v39 = vpack.c.bf16 %v4109_v58, %v4100_v49  ;;  %v3696_v25 = vpack.c.bf16 %v5639_v19, %v5640_v40  ;;  %v5650_v4 = vand.u32 4294901760, %v4169_v32  ;;  %v4670_v19 = vld [vmem:[#allocation2 + $0x18] ss:$5 sps:$4 sm:$0x11]   ;;  %v5846_v40 = vld [vmem:[#allocation29_spill] sm:$0xff]  ;;  %v5857_v61 = vld [vmem:[#allocation46_spill] sm:$0xff] }
  0x84   :  { %3435 = vmatprep.subr.bf16.mxu1 %v3434_v27  ;;  %3659 = vmatprep.subr.bf16.mxu0 %v3658_v30  ;;  %v5649_v23 = vand.u32 4294901760, %v4172_v20  ;;  %v3442_v30 = vpack.c.bf16 %v4134_v8, %v4122_v2  ;;  %v3698_v28 = vpack.c.bf16 %v5642_v52, %v5643_v57  ;;  %v5652_v27 = vand.u32 4294901760, %v5817_v13  ;;  %v5856_v13 = vld [vmem:[#allocation56_spill] sm:$0xff]  ;;  %v5858_v20 = vld [vmem:[#allocation47_spill] sm:$0xff] }
  0x85   :  { %v5651_v31 = vand.u32 4294901760, %v5818_v37  ;;  %v3446_v33 = vpack.c.bf16 %v5848_v11, %v5847_v5  ;;  %v5853_v38 = vand.u32 4294901760, %v5822_v14  ;;  %v3450_v32 = vpack.c.bf16 %v5858_v20, %v5857_v61  ;;  %v5862_v14 = vld [vmem:[#allocation62_spill] sm:$0xff] }
  0x86   :  { %v3700_v52 = vpack.c.bf16 %v5649_v23, %v5650_v4  ;;  %v5850_v23 = vld [vmem:[#allocation95_spill] sm:$0xff]  ;;  %v4692_v4 = vld [vmem:[#allocation2 + $0x22] ss:$5 sps:$4 sm:$0x11]   ;;  %v5868_v37 = vand.u32 4294901760, %v5856_v13  ;;  %v5881_v13 = vand.u32 4294901760, %v5840_v42 }
  0x87   :  { %3437 = vmatpush3.bf16.msra.mxu1 %v3436_v12  ;;  %3661 = vmatpush3.bf16.msra.mxu0 %v3660_v21  ;;  %v4666_v12 = vld [vmem:[#allocation2 + $0x4] ss:$5 sps:$4 sm:$0x11]   ;;  %v4668_v21 = vld [vmem:[#allocation2 + $0xe] ss:$5 sps:$4 sm:$0x11]  }
  0x88   :  { %3439 = vmatprep.subr.bf16.mxu1 %v3438_v50  ;;  %3695 = vmatprep.subr.bf16.mxu0 %v3694_v63  ;;  %v5844_v50 = vld [vmem:[#allocation100_spill] sm:$0xff]  ;;  %v5886_v42 = vld [vmem:[#allocation87_spill] sm:$0xff] }
  0x89   :  { %v5845_v63 = vld [vmem:[#allocation28_spill] sm:$0xff] }
  0x8a   :  { %597 = vmatmul.mubr.f32.vlgmr.msra.gmra.mrb[2].mxu1 %v4452_v17  ;;  %1597 = vmatmul.mubr.f32.vlgmr.msra.gmra.mrb[2].mxu0 %v5844_v50  ;;  %v3444_v34 = vpack.c.bf16 %v5846_v40, %v5845_v63  ;;  %v5849_v50 = vld [vmem:[#allocation97_spill] sm:$0xff]  ;;  %v5855_v17 = vld [vmem:[#allocation55_spill] sm:$0xff] }
  0x8b   :  { %3441 = vmatpush3.bf16.msra.mxu1 %v3440_v39  ;;  %3697 = vmatpush3.bf16.msra.mxu0 %v3696_v25  ;;  %v3702_v39 = vpack.c.bf16 %v5651_v31, %v5652_v27  ;;  %v5852_v31 = vld [vmem:[#allocation41_spill] sm:$0xff]  ;;  %v5854_v25 = vand.u32 4294901760, %v5823_v24  ;;  %v5863_v24 = vld [vmem:[#allocation67_spill] sm:$0xff] }
  0x8c   :  { %3443 = vmatprep.subr.bf16.mxu1 %v3442_v30  ;;  %3699 = vmatprep.subr.bf16.mxu0 %v3698_v28  ;;  %v5851_v30 = vld [vmem:[#allocation15_spill] sm:$0xff]  ;;  %v3448_v27 = vpack.c.bf16 %v5852_v31, %v5815_v15  ;;  %v5869_v28 = vld [vmem:[#allocation58_spill] sm:$0xff] }
  0x8d   :  { %732 = vmatprep.mubr.f32.mxu1 %v5849_v50  ;;  %1871 = vmatprep.mubr.f32.mxu0 %v5850_v23  ;;  %v3704_v23 = vpack.c.bf16 %v5854_v25, %v5853_v38  ;;  %v5864_v25 = vld [vmem:[#allocation68_spill] sm:$0xff]  ;;  %v5867_v38 = vand.u32 4294901760, %v5855_v17 }
  0x8f   :  { %3445 = vmatpush3.bf16.msra.mxu1 %v3444_v34  ;;  %3701 = vmatpush3.bf16.msra.mxu0 %v3700_v52  ;;  %v5859_v34 = vand.u32 4294901760, %v5824_v45  ;;  %v5860_v52 = vand.u32 4294901760, %v5825_v62  ;;  %v5866_v45 = vld [vmem:[#allocation54_spill] sm:$0xff]  ;;  %v3708_v1 = vpack.c.bf16 %v5868_v37, %v5867_v38  ;;  %v5875_v38 = vand.u32 4294901760, %v5863_v24  ;;  %v5883_v24 = vld [vmem:[#allocation83_spill] sm:$0xff] }
  0x90   :  { %3447 = vmatprep.subr.bf16.mxu1 %v3446_v33  ;;  %3703 = vmatprep.subr.bf16.mxu0 %v3702_v39  ;;  %v199_v39 = vrot.slane %v4692_v4, %v5851_v30  ;;  %v3452_v48 = vpack.c.bf16 %v5866_v45, %v5865_v59  ;;  %v3454_v33 = vpack.c.bf16 %v5870_v9, %v5869_v28  ;;  %v5876_v62 = vand.u32 4294901760, %v5864_v25  ;;  %v5877_v4 = vld [vmem:[#allocation70_spill] sm:$0xff] }
  0x91   :  { %v3706_v57 = vpack.c.bf16 %v5860_v52, %v5859_v34  ;;  %v5871_v34 = vand.u32 4294901760, %v5861_v10  ;;  %v5872_v52 = vand.u32 4294901760, %v5862_v14  ;;  %v5879_v14 = vand.u32 4294901760, %v5837_v54 }
  0x92   :  { %v3712_v50 = vpack.c.bf16 %v5876_v62, %v5875_v38  ;;  %v5882_v37 = vand.u32 4294901760, %v5841_v22  ;;  %v3462_v25 = vpack.c.bf16 %v5883_v24, %v5838_v46  ;;  %v114_v24 = vld [vmem:[#allocation5 + $0x210] sm:$0xff]  ;;  %v5887_v38 = vand.u32 4294901760, %v4396_v3  ;;  %v117_v3 = vld [vmem:[#allocation5 + $0x228] sm:$0xff] }
  0x93   :  { %3449 = vmatpush3.bf16.msra.mxu1 %v3448_v27  ;;  %3705 = vmatpush3.bf16.msra.mxu0 %v3704_v23  ;;  %v3710_v27 = vpack.c.bf16 %v5872_v52, %v5871_v34  ;;  %v5873_v23 = vld [vmem:[#allocation63_spill] sm:$0xff]  ;;  %v5880_v52 = vld [vmem:[#allocation78_spill] sm:$0xff]  ;;  %v5895_v62 = vand.u32 4294901760, %v4415_v47 }
  0x94   :  { %3451 = vmatprep.subr.bf16.mxu1 %v3450_v32  ;;  %3707 = vmatprep.subr.bf16.mxu0 %v3706_v57  ;;  %v3456_v17 = vpack.c.bf16 %v5874_v44, %v5873_v23  ;;  %v3458_v32 = vpack.c.bf16 %v5832_v29, %v5877_v4  ;;  %v5878_v57 = vand.u32 4294901760, %v5836_v26  ;;  %v3460_v10 = vpack.c.bf16 %v5880_v52, %v5833_v18  ;;  %v112_v29 = vld [vmem:[#allocation5 + $0x200] sm:$0xff]  ;;  %v113_v26 = vld [vmem:[#allocation5 + $0x208] sm:$0xff] }
  0x95   :  { %v3716_v44 = vpack.c.bf16 %v5882_v37, %v5881_v13  ;;  %v116_v13 = vld [vmem:[#allocation5 + $0x220] sm:$0xff]  ;;  %v5898_v37 = vrot.slane %v4666_v12, %v5851_v30  ;;  %v5903_v12 = vand.u32 4294901760, %v4134_v8  ;;  %v5907_v8 = vand.u32 4294901760, %v5847_v5 }
  0x96   :  { %v3714_v34 = vpack.c.bf16 %v5879_v14, %v5878_v57  ;;  %v5884_v14 = vand.u32 4294901760, %v4381_v7  ;;  %v5885_v57 = vand.u32 4294901760, %v4383_v41  ;;  %v115_v41 = vld [vmem:[#allocation5 + $0x218] sm:$0xff] }
  0x97   :  { %3453 = vmatpush3.bf16.msra.mxu1 %v3452_v48  ;;  %3709 = vmatpush3.bf16.msra.mxu0 %v3708_v1  ;;  %v5888_v48 = vand.u32 4294901760, %v4398_v53  ;;  %v5892_v53 = vand.u32 4294901760, %v4100_v49  ;;  %v5899_v49 = vrot.slane %v4670_v19, %v5851_v30  ;;  %v5904_v19 = vand.u32 4294901760, %v5845_v63 }
  0x98   :  { %v3718_v54 = vpack.c.bf16 %v5885_v57, %v5884_v14  ;;  %3455 = vmatprep.subr.bf16.mxu1 %v3454_v33  ;;  %3711 = vmatprep.subr.bf16.mxu0 %v3710_v27  ;;  %v5889_v14 = vand.u32 4294901760, %v4077_v36  ;;  %v5890_v57 = vand.u32 4294901760, %v4088_v43  ;;  %v1983_v33 = vand.u32 4294901760, %v112_v29 }
  0x99   :  { %v3720_v1 = vpack.c.bf16 %v5888_v48, %v5887_v38  ;;  %v1986_v27 = vand.u32 4294901760, %v113_v26  ;;  %v5893_v38 = vand.u32 4294901760, %v4109_v58  ;;  %v5896_v36 = vand.u32 4294901760, %v4417_v0 }
  0x9a   :  { %v4780_v22 = vpack.c.bf16 %v5890_v57, %v5889_v14  ;;  %v1989_v14 = vand.u32 4294901760, %v114_v24  ;;  %v5897_v57 = vrot.slane %v4668_v21, %v5851_v30  ;;  %v205_v7 = vcombine.low %v5899_v49, %v199_v39 }
  0x9b   :  { %v4788_v48 = vpack.c.bf16 %v5893_v38, %v5892_v53  ;;  %v3722_v43 = vpack.c.bf16 %v5896_v36, %v5895_v62  ;;  %3457 = vmatpush3.bf16.msra.mxu1 %v3456_v17  ;;  %3713 = vmatpush3.bf16.msra.mxu0 %v3712_v50  ;;  %v5900_v58 = vand.u32 4294901760, %v4622_v51  ;;  %v5901_v53 = vand.u32 4294901760, %v4627_v60  ;;  %v118_v36 = vld [vmem:[#allocation5 + $0x230] sm:$0xff] }
  0x9c   :  { %5891 = vst [vmem:[#allocation40_spill] sm:$0xff] %v4780_v22  ;;  %v202_v22 = vcombine.low %v5898_v37, %v5897_v57  ;;  %v1992_v62 = vand.u32 4294901760, %v115_v41  ;;  %v5902_v21 = vand.u32 4294901760, %v4122_v2  ;;  %v5905_v17 = vand.u32 4294901760, %v5846_v40  ;;  %3459 = vmatprep.subr.bf16.mxu1 %v3458_v32  ;;  %3715 = vmatprep.subr.bf16.mxu0 %v3714_v34 }
  0x9d   :  { %5894 = vst [vmem:[#allocation75_spill] sm:$0xff] %v4788_v48  ;;  %v4807_v38 = vpack.c.bf16 %v5901_v53, %v5900_v58  ;;  %v119_v48 = vld [vmem:[#allocation5 + $0x238] sm:$0xff]  ;;  %v1995_v39 = vand.u32 4294901760, %v116_v13  ;;  %v1998_v57 = vand.u32 4294901760, %v117_v3  ;;  %v240_v58 = vrot.slane %v205_v7, %v5851_v30 }
  0x9e   :  { %v4813_v37 = vpack.c.bf16 %v5903_v12, %v5902_v21  ;;  %v4819_v50 = vpack.c.bf16 %v5905_v17, %v5904_v19  ;;  %v219_v49 = vrot.slane %v202_v22, %v5851_v30  ;;  %v4823_v53 = vpack.c.bf16 %v1986_v27, %v1983_v33  ;;  %v123_v19 = vld [vmem:[#allocation5 + $0x258] sm:$0xff]  ;;  %v4845_v17 = vld [vmem:[#allocation5 + $0x260] sm:$0xff] }
  0x9f   :  { %v4825_v2 = vsub.f32 %v112_v29, %v1983_v33  ;;  %v5908_v63 = vand.u32 4294901760, %v5848_v11  ;;  %v5909_v40 = vand.u32 4294901760, %v5815_v15  ;;  %v5910_v32 = vand.u32 4294901760, %v5852_v31  ;;  %v120_v29 = vld [vmem:[#allocation5 + $0x240] sm:$0xff]  ;;  %v121_v33 = vld [vmem:[#allocation5 + $0x248] sm:$0xff]  ;;  %3461 = vmatpush3.bf16.msra.mxu1 %v3460_v10  ;;  %3717 = vmatpush3.bf16.msra.mxu0 %v3716_v44  ;;  %v122_v11 = vld [vmem:[#allocation5 + $0x250] sm:$0xff] }
  0xa0   :  { %5906 = vst [vmem:[#allocation82_spill] sm:$0xff] %v4823_v53  ;;  %v4839_v12 = vsub.f32 %v113_v26, %v1986_v27  ;;  %v4841_v22 = vsub.f32 %v114_v24, %v1989_v14  ;;  %v2001_v7 = vand.u32 4294901760, %v118_v36  ;;  %v2004_v30 = vand.u32 4294901760, %v119_v48  ;;  %3463 = vmatprep.subr.bf16.mxu1 %v3462_v25  ;;  %3719 = vmatprep.subr.bf16.mxu0 %v3718_v54 }
  0xa1   :  { %v4831_v21 = vpack.c.bf16 %v5908_v63, %v5907_v8  ;;  %v4837_v34 = vpack.c.bf16 %v5910_v32, %v5909_v40  ;;  %v4843_v5 = vpack.c.bf16 %v1992_v62, %v1989_v14  ;;  %v250_v15 = vcombine.low %v219_v49, %v240_v58  ;;  %v5923_v40 = vld [vmem:[#allocation66_spill] sm:$0xff] }
  0xa2   :  { %v5912_v31 = vand.u32 4294901760, %v5857_v61  ;;  %v5913_v26 = vand.u32 4294901760, %v5858_v20  ;;  %v4853_v24 = vsub.f32 %v115_v41, %v1992_v62  ;;  %v4855_v8 = vpack.c.bf16 %v1998_v57, %v1995_v39 }
  0xa3   :  { %5911 = vst [vmem:[#allocation28_spill] sm:$0xff] %v4843_v5  ;;  %v4857_v44 = vsub.f32 %v116_v13, %v1995_v39  ;;  %v4859_v10 = vsub.f32 %v117_v3, %v1998_v57  ;;  %v2007_v14 = vand.u32 4294901760, %v120_v29  ;;  %v2010_v63 = vand.u32 4294901760, %v121_v33  ;;  %3721 = vmatpush3.bf16.msra.mxu0 %v3720_v1 }
  0xa4   :  { %v4851_v27 = vpack.c.bf16 %v5913_v26, %v5912_v31  ;;  %5914 = vst [vmem:[#allocation29_spill] sm:$0xff] %v4855_v8  ;;  %v5915_v49 = vand.u32 4294901760, %v5865_v59  ;;  %v5916_v61 = vand.u32 4294901760, %v5866_v45  ;;  %v4867_v20 = vpack.c.bf16 %v2004_v30, %v2001_v7  ;;  %3723 = vmatprep.subr.bf16.mxu0 %v3722_v43 }
  0xa5   :  { %v2013_v25 = vand.u32 4294901760, %v122_v11  ;;  %v2016_v54 = vand.u32 4294901760, %v123_v19  ;;  %v2019_v41 = vand.u32 4294901760, %v4845_v17  ;;  %v5918_v13 = vpack.c.bf16 %v5886_v42, %v4385_v35 }
  0xa6   :  { %v4865_v58 = vpack.c.bf16 %v5916_v61, %v5915_v49  ;;  %5917 = vst [vmem:[#allocation34_spill] sm:$0xff] %v4867_v20  ;;  %v4873_v3 = vsub.f32 %v118_v36, %v2001_v7  ;;  %v4875_v62 = vand.u32 4294901760, %v250_v15  ;;  %v5920_v59 = vand.u32 4294901760, %v5869_v28  ;;  %v125_v28 = vld [vmem:[#allocation5 + $0x268] sm:$0xff]  ;;  %v126_v49 = vld [vmem:[#allocation5 + $0x270] sm:$0xff] }
  0xa7   :  { %3465 = vmatpush3.bf16.msra.mxu1 %v5918_v13  ;;  %v5921_v45 = vand.u32 4294901760, %v5870_v9  ;;  %v5922_v57 = vand.u32 4294901760, %v5873_v23  ;;  %v5924_v32 = vand.u32 4294901760, %v5923_v40  ;;  %v5925_v26 = vpack.c.bf16 %v4408_v56, %v4400_v55  ;;  %v127_v23 = vld [vmem:[#allocation5 + $0x278] sm:$0xff]  ;;  %3725 = vmatpush3.bf16.msra.mxu0 %v4807_v38 }
  0xa8   :  { %5919 = vst [vmem:[#allocation36_spill] sm:$0xff] %v4875_v62  ;;  %v4892_v1 = vsub.f32 %v119_v48, %v2004_v30  ;;  %v4894_v36 = vsub.f32 %v120_v29, %v2007_v14  ;;  %v5697_v9 = vand.u32 4294901760, %v4825_v2  ;;  %v5696_v7 = vand.u32 4294901760, %v4839_v12 }
  0xa9   :  { %v4881_v39 = vpack.c.bf16 %v5921_v45, %v5920_v59  ;;  %v4887_v31 = vpack.c.bf16 %v5924_v32, %v5922_v57  ;;  %3467 = vmatprep.subr.bf16.mxu1 %v5925_v26  ;;  %v5698_v13 = vand.u32 4294901760, %v4853_v24  ;;  %v5926_v59 = vand.u32 4294901760, %v5877_v4  ;;  %v5927_v45 = vld [vmem:[#allocation71_spill] sm:$0xff] }
  0xaa   :  { %v5928_v57 = vand.u32 4294901760, %v5927_v45  ;;  %v5929_v48 = vand.u32 4294901760, %v5833_v18  ;;  %v5930_v30 = vand.u32 4294901760, %v5880_v52  ;;  %v4912_v40 = vpack.c.bf16 %v2010_v63, %v2007_v14  ;;  %v5937_v14 = vld [vmem:[#allocation83_spill] sm:$0xff] }
  0xab   :  { %v4914_v32 = vsub.f32 %v121_v33, %v2010_v63  ;;  %v4916_v26 = vpack.c.bf16 %v2016_v54, %v2013_v25  ;;  %v4918_v61 = vsub.f32 %v122_v11, %v2013_v25  ;;  %v5934_v4 = vpack.c.bf16 %v4460_v16, %v4440_v6 }
  0xac   :  { %v4904_v43 = vpack.c.bf16 %v5928_v57, %v5926_v59  ;;  %v4910_v29 = vpack.c.bf16 %v5930_v30, %v5929_v48  ;;  %5932 = vst [vmem:[#allocation41_spill] sm:$0xff] %v4912_v40  ;;  %v2022_v59 = vand.u32 4294901760, %v125_v28  ;;  %v4925_v18 = vsub.f32 %v250_v15, %v4875_v62  ;;  %v5943_v57 = vld [vmem:[#allocation11_spill] sm:$0xff]  ;;  %v5970_v62 = vld [vmem:[#allocation26_spill] sm:$0xff] }
  0xad   :  { %5933 = vst [vmem:[#allocation46_spill] sm:$0xff] %v4916_v26  ;;  %3469 = vmatpush3.bf16.msra.mxu1 %v5934_v4  ;;  %v5936_v52 = vand.u32 4294901760, %v5838_v46  ;;  %v5938_v45 = vand.u32 4294901760, %v5937_v14  ;;  %v5940_v63 = vand.u32 4294901760, %v4385_v35  ;;  %v5941_v11 = vand.u32 4294901760, %v5886_v42  ;;  %v5946_v14 = vld [vmem:[#allocation96_spill] sm:$0xff] }
  0xae   :  { %5931 = vst [vmem:[#allocation15_spill] sm:$0xff] %v4910_v29  ;;  %5935 = vst [vmem:[#allocation47_spill] sm:$0xff] %v4925_v18  ;;  %3471 = vmatprep.subr.bf16.mxu1 %v5943_v57  ;;  %v5699_v48 = vmov 0.0|0.0   ;;  %v4941_v38 = vsub.f32 %v123_v19, %v2016_v54  ;;  %v2025_v15 = vand.u32 4294901760, %v126_v49  ;;  %v2028_v30 = vand.u32 4294901760, %v127_v23  ;;  %1873 = vmatmul.mubr.f32.vlgmr.msra.gmra.mrb[4].mxu0 %v5946_v14  ;;  %v5989_v29 = vld [vmem:[#allocation49_spill] sm:$0xff] }
  0xaf   :  { %v4931_v33 = vpack.c.bf16 %v5938_v45, %v5936_v52  ;;  %v4937_v25 = vpack.c.bf16 %v5941_v11, %v5940_v63  ;;  %3758 = vmatprep.subr.bf16.mxu0 %v5699_v48  ;;  %v4946_v46 = vsub.f32 %v4825_v2, %v5697_v9  ;;  %v4949_v35 = vsub.f32 %v4845_v17, %v2019_v41  ;;  %v5945_v52 = vld [vmem:[#allocation98_spill] sm:$0xff]  ;;  %v5953_v9 = vld [vmem:[#allocation13_spill] sm:$0xff] }
  0xb0   :  { %v4954_v42 = vsub.f32 %v4839_v12, %v5696_v7  ;;  %v5944_v4 = vand.u32 4294901760, %v4841_v22  ;;  %v4964_v54 = vsub.f32 %v4853_v24, %v5698_v13  ;;  %735 = vmatmul.mubr.f32.vlgmr.msra.gmra.mrb[4].mxu1 %v5945_v52  ;;  %v5947_v17 = vand.u32 4294901760, %v4400_v55  ;;  %3760 = vmatpush3.bf16.msra.mxu0 %v4823_v53 }
  0xb1   :  { %5939 = vst [vmem:[#allocation51_spill] sm:$0xff] %v4931_v33  ;;  %5942 = vst [vmem:[#allocation54_spill] sm:$0xff] %v4937_v25  ;;  %v5948_v45 = vand.u32 4294901760, %v4408_v56  ;;  %v5950_v11 = vand.u32 4294901760, %v4440_v6  ;;  %3473 = vmatpush3.bf16.msra.mxu1 %v5953_v9  ;;  %v4982_v13 = vpack.c.bf16 %v2022_v59, %v2019_v41  ;;  %v4984_v48 = vsub.f32 %v125_v28, %v2022_v59  ;;  %v5954_v56 = vld [vmem:[#allocation17_spill] sm:$0xff] }
  0xb2   :  { %v4959_v19 = vsub.f32 %v4841_v22, %v5944_v4  ;;  %v5951_v4 = vand.u32 4294901760, %v4460_v16  ;;  %v4986_v14 = vsub.f32 %v126_v49, %v2025_v15  ;;  %v5705_v55 = vand.u32 4294901760, %v4925_v18  ;;  %3475 = vmatprep.subr.bf16.mxu1 %v5954_v56  ;;  %v5956_v41 = vld [vmem:[#allocation97_spill] sm:$0xff] }
  0xb3   :  { %v4972_v63 = vpack.c.bf16 %v5948_v45, %v5947_v17  ;;  %v5955_v17 = vmov 0.0|0.0   ;;  %v4991_v6 = vpack.c.bf16 %v2028_v30, %v2025_v15  ;;  %v4993_v16 = vsub.f32 %v127_v23, %v2028_v30  ;;  %v5959_v45 = vld [vmem:[#allocation24_spill] sm:$0xff]  ;;  %v5968_v9 = vld [vmem:[#allocation25_spill] sm:$0xff] }
  0xb4   :  { %v4978_v7 = vpack.c.bf16 %v5951_v4, %v5950_v11  ;;  %3761 = vmatprep.subr.bf16.mxu0 %v5955_v17  ;;  %v5957_v4 = vand.u32 4294901760, %v5956_v41  ;;  %v5701_v28 = vmov 0.0   ;;  %v5958_v11 = vld [vmem:[#allocation21_spill] sm:$0xff]  ;;  %v5960_v30 = vld [vmem:[#allocation16_spill] sm:$0xff]  ;;  %v5971_v57 = vand.u32 4294901760, %v5970_v62 }
  0xb5   :  { %5949 = vst [vmem:[#allocation58_spill] sm:$0xff] %v4972_v63  ;;  %3196 = vmatprep.mubr.msk.f32.mxu0 %vm4018_vm0, %v5701_v28  ;;  %3477 = vmatpush3.bf16.msra.mxu1 %v5958_v11  ;;  %v5014_v28 = vsub.f32 %v4925_v18, %v5705_v55  ;;  %v5961_v23 = vand.u32 4294901760, %v5960_v30  ;;  %v5962_v55 = vld [vmem:[#allocation19_spill] sm:$0xff]  ;;  %v5964_v18 = vld [vmem:[#allocation20_spill] sm:$0xff]  ;;  %v5966_v11 = vld [vmem:[#allocation22_spill] sm:$0xff] }
  0xb6   :  { %5952 = vst [vmem:[#allocation59_spill] sm:$0xff] %v4978_v7  ;;  %839 = vmatprep.mubr.f32.mxu1 %v5957_v4  ;;  %3763 = vmatpush3.bf16.msra.mxu0 %v4843_v5  ;;  %v5963_v53 = vand.u32 4294901760, %v5962_v55  ;;  %v5965_v59 = vand.u32 4294901760, %v5964_v18  ;;  %v5969_v4 = vand.u32 4294901760, %v5968_v9  ;;  %v5987_v33 = vld [vmem:[#allocation45_spill] sm:$0xff] }
  0xb7   :  { %3479 = vmatprep.subr.bf16.mxu1 %v5959_v45  ;;  %3764 = vmatprep.subr.bf16.mxu0 %v5955_v17  ;;  %v1348_v5 = vsub.f32 %v5960_v30, %v5961_v23  ;;  %v5967_v45 = vand.u32 4294901760, %v5966_v11  ;;  %v1369_v23 = vsub.f32 %v5970_v62, %v5971_v57  ;;  %v5977_v57 = vld [vmem:[#allocation33_spill] sm:$0xff] }
  0xb8   :  { %v1355_v15 = vsub.f32 %v5962_v55, %v5963_v53  ;;  %v1236_v49 = vsub.f32 %v5964_v18, %v5965_v59  ;;  %v1362_v41 = vsub.f32 %v5968_v9, %v5969_v4  ;;  %v5972_v55 = vld [vmem:[#allocation32_spill] sm:$0xff]  ;;  %v5974_v59 = vld [vmem:[#allocation30_spill] sm:$0xff]  ;;  %v5975_v4 = vld [vmem:[#allocation35_spill] sm:$0xff] }
  0xb9   :  { %v1243_v56 = vsub.f32 %v5966_v11, %v5967_v45  ;;  %v1349_v7 = vand.u32 4294901760, %v1348_v5  ;;  %v5973_v63 = vand.u32 4294901760, %v5972_v55  ;;  %3481 = vmatpush3.bf16.msra.mxu1 %v5974_v59  ;;  %v1370_v9 = vand.u32 4294901760, %v1369_v23 }
  0xba   :  { %v1356_v53 = vand.u32 4294901760, %v1355_v15  ;;  %3766 = vmatpush3.bf16.msra.mxu0 %v4855_v8  ;;  %v1237_v45 = vand.u32 4294901760, %v1236_v49  ;;  %v1363_v25 = vand.u32 4294901760, %v1362_v41  ;;  %3483 = vmatprep.subr.bf16.mxu1 %v5975_v4  ;;  %v5978_v15 = vand.u32 4294901760, %v5977_v57  ;;  %v5983_v49 = vld [vmem:[#allocation39_spill] sm:$0xff]  ;;  %v5985_v4 = vld [vmem:[#allocation42_spill] sm:$0xff] }
  0xbb   :  { %v1250_v18 = vsub.f32 %v5972_v55, %v5973_v63  ;;  %v1244_v11 = vand.u32 4294901760, %v1243_v56  ;;  %3767 = vmatprep.subr.bf16.mxu0 %v5955_v17  ;;  %v5979_v63 = vld [vmem:[#allocation37_spill] sm:$0xff]  ;;  %v5984_v41 = vand.u32 4294901760, %v5983_v49 }
  0xbc   :  { %v5049_v62 = vpack.c.bf16 %v1356_v53, %v1349_v7  ;;  %v1257_v30 = vsub.f32 %v5977_v57, %v5978_v15  ;;  %v5980_v55 = vand.u32 4294901760, %v5979_v63  ;;  %v5059_v56 = vpack.c.bf16 %v1370_v9, %v1363_v25  ;;  %v5991_v25 = vld [vmem:[#allocation43_spill] sm:$0xff] }
  0xbd   :  { %v1251_v5 = vand.u32 4294901760, %v1250_v18  ;;  %v5057_v8 = vpack.c.bf16 %v1244_v11, %v1237_v45  ;;  %v1383_v23 = vsub.f32 %v5983_v49, %v5984_v41  ;;  %v5986_v7 = vand.u32 4294901760, %v5985_v4  ;;  %3485 = vmatpush3.bf16.msra.mxu1 %v5991_v25  ;;  %v6004_v25 = vld [vmem:[#allocation62_spill] sm:$0xff] }
  0xbe   :  { %5976 = vst [vmem:[#allocation63_spill] sm:$0xff] %v5049_v62  ;;  %v1376_v59 = vsub.f32 %v5979_v63, %v5980_v55  ;;  %5982 = vst [vmem:[#allocation78_spill] sm:$0xff] %v5059_v56  ;;  %v1258_v18 = vand.u32 4294901760, %v1257_v30  ;;  %v5988_v57 = vand.u32 4294901760, %v5987_v33  ;;  %v5990_v63 = vand.u32 4294901760, %v5989_v29  ;;  %3769 = vmatpush3.bf16.msra.mxu0 %v4867_v20  ;;  %v5992_v55 = vld [vmem:[#allocation50_spill] sm:$0xff] }
  0xbf   :  { %5981 = vst [vmem:[#allocation70_spill] sm:$0xff] %v5057_v8  ;;  %v1264_v53 = vsub.f32 %v5985_v4, %v5986_v7  ;;  %v1384_v11 = vand.u32 4294901760, %v1383_v23  ;;  %v5993_v49 = vand.u32 4294901760, %v5992_v55  ;;  %v5994_v30 = vld [vmem:[#allocation55_spill] sm:$0xff]  ;;  %v5996_v7 = vld [vmem:[#allocation48_spill] sm:$0xff]  ;;  %3770 = vmatprep.subr.bf16.mxu0 %v5955_v17 }
  0xc0   :  { %v1377_v62 = vand.u32 4294901760, %v1376_v59  ;;  %v1271_v15 = vsub.f32 %v5987_v33, %v5988_v57  ;;  %v1390_v45 = vsub.f32 %v5989_v29, %v5990_v63  ;;  %v5995_v59 = vand.u32 4294901760, %v5994_v30  ;;  %3487 = vmatprep.subr.bf16.mxu1 %v5996_v7  ;;  %v5998_v63 = vld [vmem:[#allocation56_spill] sm:$0xff] }
  0xc1   :  { %v1265_v9 = vand.u32 4294901760, %v1264_v53  ;;  %v1397_v4 = vsub.f32 %v5992_v55, %v5993_v49  ;;  %v5083_v33 = vpack.c.bf16 %v1258_v18, %v1251_v5  ;;  %v5999_v20 = vand.u32 4294901760, %v5998_v63  ;;  %v6001_v49 = vld [vmem:[#allocation61_spill] sm:$0xff] }
  0xc2   :  { %v1278_v41 = vsub.f32 %v5994_v30, %v5995_v59  ;;  %v1272_v29 = vand.u32 4294901760, %v1271_v15  ;;  %v1391_v57 = vand.u32 4294901760, %v1390_v45  ;;  %v5088_v53 = vpack.c.bf16 %v1384_v11, %v1377_v62  ;;  %v6006_v15 = vld [vmem:[#allocation67_spill] sm:$0xff]  ;;  %3772 = vmatpush3.bf16.msra.mxu0 %v4912_v40 }
  0xc3   :  { %5997 = vst [vmem:[#allocation87_spill] sm:$0xff] %v5083_v33  ;;  %v1285_v23 = vsub.f32 %v5998_v63, %v5999_v20  ;;  %v1398_v56 = vand.u32 4294901760, %v1397_v4  ;;  %v6002_v8 = vand.u32 4294901760, %v6001_v49  ;;  %v6005_v5 = vand.u32 4294901760, %v6004_v25  ;;  %v6008_v20 = vld [vmem:[#allocation53_spill] sm:$0xff]  ;;  %v6010_v4 = vld [vmem:[#allocation68_spill] sm:$0xff]  ;;  %3773 = vmatprep.subr.bf16.mxu0 %v5955_v17 }
  0xc4   :  { %6000 = vst [vmem:[#allocation66_spill] sm:$0xff] %v5088_v53  ;;  %v1279_v55 = vand.u32 4294901760, %v1278_v41  ;;  %v5093_v59 = vpack.c.bf16 %v1272_v29, %v1265_v9  ;;  %v6007_v45 = vand.u32 4294901760, %v6006_v15  ;;  %3489 = vmatpush3.bf16.msra.mxu1 %v6008_v20  ;;  %v6012_v41 = vld [vmem:[#allocation73_spill] sm:$0xff]  ;;  %v6018_v40 = vld [vmem:[#allocation79_spill] sm:$0xff] }
  0xc5   :  { %v1404_v30 = vsub.f32 %v6001_v49, %v6002_v8  ;;  %v1286_v7 = vand.u32 4294901760, %v1285_v23  ;;  %v1411_v18 = vsub.f32 %v6004_v25, %v6005_v5  ;;  %v5103_v62 = vpack.c.bf16 %v1398_v56, %v1391_v57  ;;  %v6014_v25 = vld [vmem:[#allocation60_spill] sm:$0xff] }
  0xc6   :  { %6003 = vst [vmem:[#allocation71_spill] sm:$0xff] %v5093_v59  ;;  %v1292_v33 = vsub.f32 %v6006_v15, %v6007_v45  ;;  %v6011_v8 = vand.u32 4294901760, %v6010_v4  ;;  %v6013_v29 = vand.u32 4294901760, %v6012_v41  ;;  %3491 = vmatprep.subr.bf16.mxu1 %v6014_v25  ;;  %v6016_v15 = vld [vmem:[#allocation74_spill] sm:$0xff]  ;;  %3775 = vmatpush3.bf16.msra.mxu0 %v4916_v26 }
  0xc7   :  { %6009 = vst [vmem:[#allocation83_spill] sm:$0xff] %v5103_v62  ;;  %v1405_v11 = vand.u32 4294901760, %v1404_v30  ;;  %v5113_v23 = vpack.c.bf16 %v1286_v7, %v1279_v55  ;;  %v1412_v49 = vand.u32 4294901760, %v1411_v18  ;;  %v6017_v56 = vand.u32 4294901760, %v6016_v15  ;;  %v6020_v62 = vld [vmem:[#allocation80_spill] sm:$0xff]  ;;  %v6022_v55 = vld [vmem:[#allocation85_spill] sm:$0xff]  ;;  %3776 = vmatprep.subr.bf16.mxu0 %v5955_v17 }
  0xc8   :  { %v1299_v9 = vsub.f32 %v6010_v4, %v6011_v8  ;;  %v1418_v63 = vsub.f32 %v6012_v41, %v6013_v29  ;;  %v1293_v5 = vand.u32 4294901760, %v1292_v33  ;;  %v6019_v4 = vand.u32 4294901760, %v6018_v40 }
  0xc9   :  { %6015 = vst [vmem:[#allocation98_spill] sm:$0xff] %v5113_v23  ;;  %v1425_v57 = vsub.f32 %v6016_v15, %v6017_v56  ;;  %v6021_v41 = vand.u32 4294901760, %v6020_v62  ;;  %v5124_v59 = vpack.c.bf16 %v1412_v49, %v1405_v11  ;;  %v6023_v18 = vand.u32 4294901760, %v6022_v55  ;;  %v6024_v23 = vld [vmem:[#allocation86_spill] sm:$0xff] }
  0xca   :  { %v1300_v30 = vand.u32 4294901760, %v1299_v9  ;;  %v1419_v45 = vand.u32 4294901760, %v1418_v63  ;;  %v1306_v8 = vsub.f32 %v6018_v40, %v6019_v4  ;;  %v6025_v53 = vand.u32 4294901760, %v6024_v23  ;;  %v6026_v63 = vld [vmem:[#allocation65_spill] sm:$0xff]  ;;  %3778 = vmatpush3.bf16.msra.mxu0 %v4982_v13 }
  0xcb   :  { %v1313_v29 = vsub.f32 %v6020_v62, %v6021_v41  ;;  %v1426_v7 = vand.u32 4294901760, %v1425_v57  ;;  %v1432_v33 = vsub.f32 %v6022_v55, %v6023_v18  ;;  %3493 = vmatpush3.bf16.msra.mxu1 %v6026_v63  ;;  %v6027_v62 = vld [vmem:[#allocation90_spill] sm:$0xff]  ;;  %v6029_v57 = vld [vmem:[#allocation72_spill] sm:$0xff]  ;;  %3779 = vmatprep.subr.bf16.mxu0 %v5955_v17 }
  0xcc   :  { %v1439_v9 = vsub.f32 %v6024_v23, %v6025_v53  ;;  %v5134_v40 = vpack.c.bf16 %v1300_v30, %v1293_v5  ;;  %v1307_v15 = vand.u32 4294901760, %v1306_v8  ;;  %v6028_v11 = vand.u32 4294901760, %v6027_v62  ;;  %3495 = vmatprep.subr.bf16.mxu1 %v6029_v57  ;;  %v6030_v23 = vld [vmem:[#allocation91_spill] sm:$0xff] }
  0xcd   :  { %v1314_v56 = vand.u32 4294901760, %v1313_v29  ;;  %v5141_v4 = vpack.c.bf16 %v1426_v7, %v1419_v45  ;;  %v1433_v41 = vand.u32 4294901760, %v1432_v33  ;;  %v6031_v55 = vand.u32 4294901760, %v6030_v23 }
  0xce   :  { %v1320_v49 = vsub.f32 %v6027_v62, %v6028_v11  ;;  %v1440_v53 = vand.u32 4294901760, %v1439_v9  ;;  %v6032_v8 = vand.u32 4294901760, %v4415_v47  ;;  %v6033_v62 = vand.u32 4294901760, %v4417_v0  ;;  %3781 = vmatpush3.bf16.msra.mxu0 %v4991_v6 }
  0xcf   :  { %v1327_v18 = vsub.f32 %v6030_v23, %v6031_v55  ;;  %v5146_v5 = vpack.c.bf16 %v1314_v56, %v1307_v15  ;;  %v6034_v7 = vand.u32 4294901760, %v4622_v51  ;;  %v6035_v9 = vand.u32 4294901760, %v4627_v60  ;;  %v6036_v56 = vld [vmem:[#allocation77_spill] sm:$0xff]  ;;  %3782 = vmatprep.subr.bf16.mxu0 %v5955_v17 }
  0xd0   :  { %v1321_v30 = vand.u32 4294901760, %v1320_v49  ;;  %v1446_v29 = vsub.f32 %v4415_v47, %v6032_v8  ;;  %v1453_v11 = vsub.f32 %v4417_v0, %v6033_v62  ;;  %v5154_v26 = vpack.c.bf16 %v1440_v53, %v1433_v41  ;;  %3497 = vmatpush3.bf16.msra.mxu1 %v6036_v56 }
  0xd1   :  { %v1328_v45 = vand.u32 4294901760, %v1327_v18  ;;  %v1334_v33 = vsub.f32 %v4622_v51, %v6034_v7  ;;  %v1341_v15 = vsub.f32 %v4627_v60, %v6035_v9  ;;  %v6037_v23 = vand.u32 4294901760, %v4825_v2  ;;  %v6041_v18 = vld [vmem:[#allocation84_spill] sm:$0xff] }
  0xd2   :  { %v1447_v47 = vand.u32 4294901760, %v1446_v29  ;;  %v1454_v49 = vand.u32 4294901760, %v1453_v11  ;;  %v6038_v0 = vand.u32 4294901760, %v4839_v12  ;;  %v6039_v53 = vand.u32 4294901760, %v4841_v22  ;;  %3499 = vmatprep.subr.bf16.mxu1 %v6041_v18 }
  0xd3   :  { %v6040_v51 = vand.u32 4294901760, %v4853_v24  ;;  %v5178_v60 = vpack.c.bf16 %v1328_v45, %v1321_v30  ;;  %v1335_v8 = vand.u32 4294901760, %v1334_v33  ;;  %v1342_v29 = vand.u32 4294901760, %v1341_v15 }
  0xd4   :  { %v5168_v41 = vpack.c.bf16 %v6038_v0, %v6037_v23  ;;  %v6042_v62 = vand.u32 4294901760, %v4857_v44  ;;  %v6043_v11 = vand.u32 4294901760, %v4859_v10  ;;  %v5186_v9 = vpack.c.bf16 %v1454_v49, %v1447_v47 }
  0xd5   :  { %v5174_v55 = vpack.c.bf16 %v6040_v51, %v6039_v53  ;;  %v6044_v23 = vand.u32 4294901760, %v4873_v3  ;;  %v6045_v0 = vand.u32 4294901760, %v4892_v1  ;;  %v6047_v51 = vand.u32 4294901760, %v4894_v36 }
  0xd6   :  { %v5184_v7 = vpack.c.bf16 %v6043_v11, %v6042_v62  ;;  %v6048_v30 = vand.u32 4294901760, %v4914_v32  ;;  %v6050_v33 = vand.u32 4294901760, %v4918_v61  ;;  %v6051_v15 = vand.u32 4294901760, %v4941_v38 }
  0xd7   :  { %v5192_v53 = vpack.c.bf16 %v6045_v0, %v6044_v23  ;;  %v2067_v47 = vand.u32 4294901760, %v5014_v28  ;;  %v5207_v49 = vpack.c.bf16 %v1342_v29, %v1335_v8  ;;  %v6052_v11 = vand.u32 4294901760, %v4949_v35 }
  0xd8   :  { %v5198_v45 = vpack.c.bf16 %v6048_v30, %v6047_v51  ;;  %v5204_v62 = vpack.c.bf16 %v6051_v15, %v6050_v33  ;;  %v6053_v23 = vand.u32 4294901760, %v4984_v48  ;;  %v6056_v51 = vand.u32 4294901760, %v4993_v16 }
  0xd9   :  { %6046 = vst [vmem:[#allocation97_spill] sm:$0xff] %v5192_v53  ;;  %v6055_v53 = vand.u32 4294901760, %v4986_v14  ;;  %v6059_v28 = vand.u32 4294901760, %v4946_v46  ;;  %v6060_v8 = vand.u32 4294901760, %v4954_v42  ;;  %v6061_v33 = vand.u32 4294901760, %v4857_v44  ;;  %3197 = vmatmul.mubr.f32.vlgmr.msra.gmra.mrb[6].mxu0 %v2067_v47 }
  0xda   :  { %6049 = vst [vmem:[#allocation16_spill] sm:$0xff] %v5198_v45  ;;  %v5213_v0 = vpack.c.bf16 %v6053_v23, %v6052_v11  ;;  %v6058_v45 = vld [vmem:[#allocation89_spill] sm:$0xff]  ;;  %v6062_v11 = vand.u32 4294901760, %v4859_v10  ;;  %v6065_v46 = vand.u32 4294901760, %v4959_v19  ;;  %v6066_v42 = vand.u32 4294901760, %v4964_v54 }
  0xdb   :  { %v5219_v30 = vpack.c.bf16 %v6056_v51, %v6055_v53  ;;  %3501 = vmatpush3.bf16.msra.mxu1 %v6058_v45  ;;  %v3783_v29 = vpack.c.bf16 %v6060_v8, %v6059_v28  ;;  %v2105_v15 = vsub.f32 %v4857_v44, %v6061_v33  ;;  %v6064_v53 = vand.u32 4294901760, %v5945_v52  ;;  %v6067_v28 = vld [vmem:[#allocation75_spill] sm:$0xff]  ;;  %v6070_v19 = vld [vmem:[#allocation93_spill] sm:$0xff] }
  0xdc   :  { %6054 = vst [vmem:[#allocation19_spill] sm:$0xff] %v5213_v0  ;;  %v2112_v23 = vsub.f32 %v4859_v10, %v6062_v11  ;;  %v6063_v0 = vld [vmem:[#allocation40_spill] sm:$0xff]  ;;  %v3786_v51 = vpack.c.bf16 %v6066_v42, %v6065_v46  ;;  %v6068_v11 = vand.u32 4294901760, %v4873_v3  ;;  %v6071_v54 = vmov 0.0  }
  0xdd   :  { %6057 = vst [vmem:[#allocation20_spill] sm:$0xff] %v5219_v30  ;;  %3503 = vmatprep.subr.bf16.mxu1 %v6063_v0  ;;  %3784 = vmatpush3.bf16.msra.mxu0 %v3783_v29  ;;  %v2106_v8 = vand.u32 4294901760, %v2105_v15  ;;  %v6069_v30 = vand.u32 4294901760, %v4892_v1  ;;  %v6072_v47 = vand.u32 4294901760, %v4894_v36  ;;  %v6073_v15 = vand.u32 4294901760, %v4914_v32 }
  0xde   :  { %843 = vmatmul.mubr.f32.vlgmr.msra.gmra.mrb[6].mxu1 %v6064_v53  ;;  %v2113_v33 = vand.u32 4294901760, %v2112_v23  ;;  %v2119_v0 = vsub.f32 %v4873_v3, %v6068_v11  ;;  %3785 = vmatprep.subr.bf16.mxu0 %v5955_v17  ;;  %v6074_v11 = vand.u32 4294901760, %v4918_v61 }
  0xdf   :  { %3505 = vmatpush3.bf16.msra.mxu1 %v6067_v28  ;;  %v2126_v52 = vsub.f32 %v4892_v1, %v6069_v30  ;;  %1009 = vmatprep.mubr.f32.mxu1 %v6070_v19  ;;  %v2133_v29 = vsub.f32 %v4894_v36, %v6072_v47  ;;  %v2140_v23 = vsub.f32 %v4914_v32, %v6073_v15 }
  0xe0   :  { %3507 = vmatprep.subr.bf16.mxu1 %v4813_v37  ;;  %3231 = vmatprep.mubr.msk.f32.mxu0 %vm4018_vm0, %v6071_v54  ;;  %v3789_v30 = vpack.c.bf16 %v2113_v33, %v2106_v8  ;;  %v2120_v37 = vand.u32 4294901760, %v2119_v0  ;;  %v2147_v47 = vsub.f32 %v4918_v61, %v6074_v11  ;;  %v6076_v33 = vand.u32 4294901760, %v4949_v35  ;;  %v6081_v11 = vld [vmem:[#allocation51_spill] sm:$0xff] }
  0xe1   :  { %3787 = vmatpush3.bf16.msra.mxu0 %v3786_v51  ;;  %v2127_v53 = vand.u32 4294901760, %v2126_v52  ;;  %v2134_v46 = vand.u32 4294901760, %v2133_v29  ;;  %v2141_v42 = vand.u32 4294901760, %v2140_v23  ;;  %v6077_v52 = vand.u32 4294901760, %v4984_v48 }
  0xe2   :  { %3788 = vmatprep.subr.bf16.mxu0 %v5955_v17  ;;  %v2148_v8 = vand.u32 4294901760, %v2147_v47  ;;  %v2161_v0 = vsub.f32 %v4949_v35, %v6076_v33  ;;  %v6088_v33 = vld [vmem:[#allocation13_spill] sm:$0xff] }
  0xe3   :  { %3509 = vmatpush3.bf16.msra.mxu1 %v4819_v50  ;;  %v3792_v28 = vpack.c.bf16 %v2127_v53, %v2120_v37  ;;  %v6075_v50 = vand.u32 4294901760, %v4941_v38  ;;  %v2168_v29 = vsub.f32 %v4984_v48, %v6077_v52  ;;  %v6079_v37 = vand.u32 4294901760, %v4993_v16  ;;  %v6089_v52 = vld [vmem:[#allocation17_spill] sm:$0xff] }
  0xe4   :  { %3511 = vmatprep.subr.bf16.mxu1 %v4831_v21  ;;  %v3795_v21 = vpack.c.bf16 %v2141_v42, %v2134_v46  ;;  %v2162_v23 = vand.u32 4294901760, %v2161_v0  ;;  %v3810_v0 = vpack.c.bf16 %v4853_v24, %v4841_v22  ;;  %v6092_v22 = vld [vmem:[#allocation30_spill] sm:$0xff]  ;;  %v3816_v24 = vpack.c.bf16 %v4892_v1, %v4873_v3 }
  0xe5   :  { %3790 = vmatpush3.bf16.msra.mxu0 %v3789_v30  ;;  %v2154_v51 = vsub.f32 %v4941_v38, %v6075_v50  ;;  %v2169_v30 = vand.u32 4294901760, %v2168_v29  ;;  %v2182_v53 = vsub.f32 %v4993_v16, %v6079_v37  ;;  %v6083_v50 = vld [vmem:[#allocation58_spill] sm:$0xff]  ;;  %v6091_v29 = vld [vmem:[#allocation24_spill] sm:$0xff]  ;;  %v3822_v3 = vpack.c.bf16 %v4941_v38, %v4918_v61  ;;  %v6096_v61 = vld [vmem:[#allocation63_spill] sm:$0xff] }
  0xe6   :  { %3791 = vmatprep.subr.bf16.mxu0 %v5955_v17  ;;  %v3825_v1 = vpack.c.bf16 %v4984_v48, %v4949_v35  ;;  %v6098_v48 = vld [vmem:[#allocation70_spill] sm:$0xff]  ;;  %v6123_v37 = vld [vmem:[#allocation44_spill] sm:$0xff] }
  0xe7   :  { %3513 = vmatpush3.bf16.msra.mxu1 %v4837_v34  ;;  %v2155_v34 = vand.u32 4294901760, %v2154_v51  ;;  %v3801_v46 = vpack.c.bf16 %v2169_v30, %v2162_v23  ;;  %v3807_v51 = vpack.c.bf16 %v4839_v12, %v4825_v2  ;;  %v6090_v2 = vld [vmem:[#allocation21_spill] sm:$0xff]  ;;  %v3813_v12 = vpack.c.bf16 %v4859_v10, %v4857_v44  ;;  %v6095_v10 = vld [vmem:[#allocation48_spill] sm:$0xff]  ;;  %v6099_v38 = vld [vmem:[#allocation82_spill] sm:$0xff] }
  0xe8   :  { %3515 = vmatprep.subr.bf16.mxu1 %v4851_v27  ;;  %v6078_v27 = vand.u32 4294901760, %v4986_v14  ;;  %v3819_v44 = vpack.c.bf16 %v4914_v32, %v4894_v36  ;;  %v3828_v36 = vpack.c.bf16 %v4993_v16, %v4986_v14  ;;  %v6097_v32 = vld [vmem:[#allocation47_spill] sm:$0xff]  ;;  %v6100_v35 = vld [vmem:[#allocation78_spill] sm:$0xff] }
  0xe9   :  { %3793 = vmatpush3.bf16.msra.mxu0 %v3792_v28  ;;  %v2183_v28 = vand.u32 4294901760, %v2182_v53  ;;  %v6102_v16 = vld [vmem:[#allocation87_spill] sm:$0xff]  ;;  %v6124_v53 = vld [vmem:[#allocation97_spill] sm:$0xff] }
  0xea   :  { %3794 = vmatprep.subr.bf16.mxu0 %v5955_v17  ;;  %v2175_v15 = vsub.f32 %v4986_v14, %v6078_v27  ;;  %v6094_v27 = vld [vmem:[#allocation43_spill] sm:$0xff] }
  0xeb   :  { %3517 = vmatpush3.bf16.msra.mxu1 %v4865_v58  ;;  %v3798_v58 = vpack.c.bf16 %v2155_v34, %v2148_v8  ;;  %v6086_v8 = vld [vmem:[#allocation94_spill] sm:$0xff]  ;;  %v6087_v34 = vld [vmem:[#allocation36_spill] sm:$0xff]  ;;  %v6101_v14 = vld [vmem:[#allocation95_spill] sm:$0xff] }
  0xec   :  { %3519 = vmatprep.subr.bf16.mxu1 %v4881_v39  ;;  %v6080_v39 = vld [vmem:[#allocation15_spill] sm:$0xff]  ;;  %v2176_v42 = vand.u32 4294901760, %v2175_v15  ;;  %v6110_v15 = vld [vmem:[#allocation41_spill] sm:$0xff] }
  0xed   :  { %3796 = vmatpush3.bf16.msra.mxu0 %v3795_v21  ;;  %v6085_v21 = vld [vmem:[#allocation11_spill] sm:$0xff] }
  0xee   :  { %3797 = vmatprep.subr.bf16.mxu0 %v5955_v17  ;;  %v3804_v47 = vpack.c.bf16 %v2183_v28, %v2176_v42  ;;  %v6120_v23 = vld [vmem:[#allocation27_spill] sm:$0xff]  ;;  %v6128_v42 = vld [vmem:[#allocation64_spill] sm:$0xff] }
  0xef   :  { %3521 = vmatpush3.bf16.msra.mxu1 %v4887_v31  ;;  %v6082_v31 = vld [vmem:[#allocation54_spill] sm:$0xff]  ;;  %v6121_v30 = vld [vmem:[#allocation31_spill] sm:$0xff] }
  0xf0   :  { %3523 = vmatprep.subr.bf16.mxu1 %v4904_v43  ;;  %v6084_v43 = vld [vmem:[#allocation59_spill] sm:$0xff] }
  0xf1   :  { %3799 = vmatpush3.bf16.msra.mxu0 %v3798_v58  ;;  %v6111_v58 = vld [vmem:[#allocation46_spill] sm:$0xff] }
  0xf2   :  { %3800 = vmatprep.subr.bf16.mxu0 %v5955_v17 }
  0xf3   :  { %3525 = vmatpush3.bf16.msra.mxu1 %v6080_v39  ;;  %v6125_v39 = vld [vmem:[#allocation52_spill] sm:$0xff] }
  0xf4   :  { %3527 = vmatprep.subr.bf16.mxu1 %v6081_v11 }
  0xf5   :  { %3802 = vmatpush3.bf16.msra.mxu0 %v3801_v46  ;;  %v6127_v46 = vld [vmem:[#allocation16_spill] sm:$0xff] }
  0xf6   :  { %3803 = vmatprep.subr.bf16.mxu0 %v5955_v17 }
  0xf7   :  { %3529 = vmatpush3.bf16.msra.mxu1 %v6082_v31 }
  0xf8   :  { %3531 = vmatprep.subr.bf16.mxu1 %v6083_v50  ;;  %v6129_v50 = vld [vmem:[#allocation69_spill] sm:$0xff] }
  0xf9   :  { %3805 = vmatpush3.bf16.msra.mxu0 %v3804_v47 }
  0xfa   :  { %3806 = vmatprep.subr.bf16.mxu0 %v5955_v17 }
  0xfb   :  { %3533 = vmatpush3.bf16.msra.mxu1 %v6084_v43 }
  0xfc   :  { %3535 = vmatprep.subr.bf16.mxu1 %v6085_v21  ;;  %3232 = vmatmul.mubr.f32.vlgmr.msra.gmra.mrb[6].mxu0 %v6087_v34  ;;  %v6131_v21 = vld [vmem:[#allocation81_spill] sm:$0xff] }
  0xfd   :  { %3808 = vmatpush3.bf16.msra.mxu0 %v3807_v51  ;;  %3266 = vmatprep.mubr.msk.f32.mxu0 %vm4018_vm0, %v6071_v54  ;;  %v6130_v51 = vld [vmem:[#allocation76_spill] sm:$0xff] }
  0xfe   :  { %1011 = vmatmul.mubr.f32.vlgmr.msra.gmra.mrb[8].mxu1 %v6086_v8  ;;  %3809 = vmatprep.subr.bf16.mxu0 %v5955_v17 }
  0xff   :  { %3537 = vmatpush3.bf16.msra.mxu1 %v6088_v33  ;;  %1113 = vmatprep.mubr.f32.mxu1 %v6070_v19  ;;  %v6093_v19 = vld [vmem:[#allocation35_spill] sm:$0xff]  ;;  %v6133_v33 = vld [vmem:[#allocation88_spill] sm:$0xff] }
 0x100   :  { %3539 = vmatprep.subr.bf16.mxu1 %v6089_v52  ;;  %v6135_v52 = vld [vmem:[#allocation20_spill] sm:$0xff] }
 0x101   :  { %3811 = vmatpush3.bf16.msra.mxu0 %v3810_v0  ;;  %v6134_v0 = vld [vmem:[#allocation92_spill] sm:$0xff] }
 0x102   :  { %3812 = vmatprep.subr.bf16.mxu0 %v5955_v17 }
 0x103   :  { %3541 = vmatpush3.bf16.msra.mxu1 %v6090_v2 }
 0x104   :  { %3543 = vmatprep.subr.bf16.mxu1 %v6091_v29 }
 0x105   :  { %3814 = vmatpush3.bf16.msra.mxu0 %v3813_v12 }
 0x106   :  { %3815 = vmatprep.subr.bf16.mxu0 %v5955_v17 }
 0x107   :  { %3545 = vmatpush3.bf16.msra.mxu1 %v6092_v22 }
 0x108   :  { %3547 = vmatprep.subr.bf16.mxu1 %v6093_v19 }
 0x109   :  { %3817 = vmatpush3.bf16.msra.mxu0 %v3816_v24 }
 0x10a   :  { %3818 = vmatprep.subr.bf16.mxu0 %v5955_v17 }
 0x10b   :  { %3549 = vmatpush3.bf16.msra.mxu1 %v6094_v27 }
 0x10c   :  { %3551 = vmatprep.subr.bf16.mxu1 %v6095_v10 }
 0x10d   :  { %3820 = vmatpush3.bf16.msra.mxu0 %v3819_v44 }
 0x10e   :  { %3821 = vmatprep.subr.bf16.mxu0 %v5955_v17 }
 0x10f   :  { %3553 = vmatpush3.bf16.msra.mxu1 %v6008_v20  ;;  %v6103_v20 = vld [vmem:[#allocation28_spill] sm:$0xff] }
 0x110   :  { %3555 = vmatprep.subr.bf16.mxu1 %v6014_v25  ;;  %v6104_v25 = vld [vmem:[#allocation66_spill] sm:$0xff] }
 0x111   :  { %3823 = vmatpush3.bf16.msra.mxu0 %v3822_v3 }
 0x112   :  { %3824 = vmatprep.subr.bf16.mxu0 %v5955_v17 }
 0x113   :  { %3557 = vmatpush3.bf16.msra.mxu1 %v6026_v63  ;;  %v6105_v63 = vld [vmem:[#allocation71_spill] sm:$0xff] }
 0x114   :  { %3559 = vmatprep.subr.bf16.mxu1 %v6029_v57  ;;  %v6106_v57 = vld [vmem:[#allocation29_spill] sm:$0xff] }
 0x115   :  { %3826 = vmatpush3.bf16.msra.mxu0 %v3825_v1 }
 0x116   :  { %3827 = vmatprep.subr.bf16.mxu0 %v5955_v17 }
 0x117   :  { %3561 = vmatpush3.bf16.msra.mxu1 %v6036_v56  ;;  %v6107_v56 = vld [vmem:[#allocation83_spill] sm:$0xff] }
 0x118   :  { %3563 = vmatprep.subr.bf16.mxu1 %v6041_v18  ;;  %v6108_v18 = vld [vmem:[#allocation98_spill] sm:$0xff] }
 0x119   :  { %3829 = vmatpush3.bf16.msra.mxu0 %v3828_v36 }
 0x11a   :  { %3830 = vmatprep.subr.bf16.mxu0 %v5955_v17 }
 0x11b   :  { %3565 = vmatpush3.bf16.msra.mxu1 %v6058_v45  ;;  %v6109_v45 = vld [vmem:[#allocation34_spill] sm:$0xff] }
 0x11c   :  { %3599 = vmatprep.subr.bf16.mxu1 %v6096_v61  ;;  %3267 = vmatmul.mubr.f32.vlgmr.msra.gmra.mrb[6].mxu0 %v6097_v32 }
 0x11d   :  { %3832 = vmatpush3.bf16.msra.mxu0 %v6099_v38  ;;  %3301 = vmatprep.mubr.msk.f32.mxu0 %vm4018_vm0, %v6071_v54 }
 0x11e   :  { %1115 = vmatmul.mubr.f32.vlgmr.msra.gmra.mrb[10].mxu1 %v6086_v8  ;;  %3833 = vmatprep.subr.bf16.mxu0 %v5955_v17  ;;  %v6132_v8 = vld [vmem:[#allocation19_spill] sm:$0xff] }
 0x11f   :  { %3601 = vmatpush3.bf16.msra.mxu1 %v6098_v48  ;;  %1457 = vmatprep.mubr.f32.mxu1 %v6101_v14 }
 0x120   :  { %3603 = vmatprep.subr.bf16.mxu1 %v6100_v35 }
 0x121   :  { %3835 = vmatpush3.bf16.msra.mxu0 %v6103_v20 }
 0x122   :  { %3836 = vmatprep.subr.bf16.mxu0 %v5955_v17 }
 0x123   :  { %3605 = vmatpush3.bf16.msra.mxu1 %v6102_v16 }
 0x124   :  { %3607 = vmatprep.subr.bf16.mxu1 %v6104_v25 }
 0x125   :  { %3838 = vmatpush3.bf16.msra.mxu0 %v6106_v57 }
 0x126   :  { %3839 = vmatprep.subr.bf16.mxu0 %v5955_v17 }
 0x127   :  { %3609 = vmatpush3.bf16.msra.mxu1 %v6105_v63 }
 0x128   :  { %3611 = vmatprep.subr.bf16.mxu1 %v6107_v56 }
 0x129   :  { %3841 = vmatpush3.bf16.msra.mxu0 %v6109_v45 }
 0x12a   :  { %3842 = vmatprep.subr.bf16.mxu0 %v5955_v17 }
 0x12b   :  { %3613 = vmatpush3.bf16.msra.mxu1 %v6108_v18 }
 0x12c   :  { %3615 = vmatprep.subr.bf16.mxu1 %v5124_v59  ;;  %v6112_v59 = vld [vmem:[#allocation12_spill] sm:$0xff] }
 0x12d   :  { %3844 = vmatpush3.bf16.msra.mxu0 %v6110_v15 }
 0x12e   :  { %3845 = vmatprep.subr.bf16.mxu0 %v5955_v17 }
 0x12f   :  { %3617 = vmatpush3.bf16.msra.mxu1 %v5134_v40  ;;  %v6113_v40 = vld [vmem:[#allocation96_spill] sm:$0xff] }
 0x130   :  { %3619 = vmatprep.subr.bf16.mxu1 %v5141_v4  ;;  %v6115_v4 = vld [vmem:[#allocation14_spill] sm:$0xff] }
 0x131   :  { %3847 = vmatpush3.bf16.msra.mxu0 %v6111_v58 }
 0x132   :  { %3848 = vmatprep.subr.bf16.mxu0 %v5955_v17 }
 0x133   :  { %3621 = vmatpush3.bf16.msra.mxu1 %v5146_v5  ;;  %v6116_v5 = vld [vmem:[#allocation18_spill] sm:$0xff] }
 0x134   :  { %3623 = vmatprep.subr.bf16.mxu1 %v5154_v26  ;;  %v6114_v26 = vand.u32 4294901760, %v6097_v32 }
 0x135   :  { %3850 = vmatpush3.bf16.msra.mxu0 %v4982_v13 }
 0x136   :  { %3851 = vmatprep.subr.bf16.mxu0 %v5955_v17 }
 0x137   :  { %3625 = vmatpush3.bf16.msra.mxu1 %v5178_v60  ;;  %v6117_v60 = vld [vmem:[#allocation99_spill] sm:$0xff] }
 0x138   :  { %3627 = vmatprep.subr.bf16.mxu1 %v5186_v9  ;;  %v6118_v9 = vand.u32 4294901760, %v6117_v60 }
 0x139   :  { %3853 = vmatpush3.bf16.msra.mxu0 %v4991_v6 }
 0x13a   :  { %3854 = vmatprep.subr.bf16.mxu0 %v5955_v17 }
 0x13b   :  { %3629 = vmatpush3.bf16.msra.mxu1 %v5207_v49  ;;  %v6119_v49 = vld [vmem:[#allocation23_spill] sm:$0xff] }
 0x13c   :  { %3663 = vmatprep.subr.bf16.mxu1 %v6112_v59  ;;  %3302 = vmatmul.mubr.f32.vlgmr.msra.gmra.mrb[6].mxu0 %v6114_v26 }
 0x13d   :  { %3856 = vmatpush3.bf16.msra.mxu0 %v5168_v41  ;;  %3336 = vmatprep.mubr.msk.f32.mxu0 %vm4018_vm0, %v6071_v54  ;;  %v6122_v41 = vld [vmem:[#allocation38_spill] sm:$0xff]  ;;  %v2884_v28 = vpop.f32.mrb[0].mxu0 }
 0x13e   :  { %1459 = vmatmul.mubr.f32.vlgmr.msra.gmra.mrb[12].mxu1 %v6113_v40  ;;  %3857 = vmatprep.subr.bf16.mxu0 %v5955_v17  ;;  %v2885_v31 = vpop.f32.mrb[1].mxu0 }
 0x13f   :  { %3665 = vmatpush3.bf16.msra.mxu1 %v6115_v4  ;;  %1701 = vmatprep.mubr.f32.mxu1 %v6118_v9  ;;  %v5409_v43 = vadd.f32 %v2885_v31, %v2884_v28 }
 0x140   :  { %3667 = vmatprep.subr.bf16.mxu1 %v6116_v5 }
 0x141   :  { %3859 = vmatpush3.bf16.msra.mxu0 %v5174_v55  ;;  %v6126_v55 = vld [vmem:[#allocation57_spill] sm:$0xff] }
 0x142   :  { %3860 = vmatprep.subr.bf16.mxu0 %v5955_v17 }
 0x143   :  { %3669 = vmatpush3.bf16.msra.mxu1 %v6119_v49 }
 0x144   :  { %3671 = vmatprep.subr.bf16.mxu1 %v6120_v23 }
 0x145   :  { %3862 = vmatpush3.bf16.msra.mxu0 %v5184_v7  ;;  %v2674_v7 = vpop.f32.mrb[0].mxu1 }
 0x146   :  { %3863 = vmatprep.subr.bf16.mxu0 %v5955_v17  ;;  %v2675_v11 = vpop.f32.mrb[1].mxu1 }
 0x147   :  { %3673 = vmatpush3.bf16.msra.mxu1 %v6121_v30  ;;  %v2676_v47 = vadd.f32 %v2675_v11, %v2674_v7 }
 0x148   :  { %3675 = vmatprep.subr.bf16.mxu1 %v6122_v41 }
 0x149   :  { %3865 = vmatpush3.bf16.msra.mxu0 %v6124_v53 }
 0x14a   :  { %3866 = vmatprep.subr.bf16.mxu0 %v5955_v17 }
 0x14b   :  { %3677 = vmatpush3.bf16.msra.mxu1 %v6123_v37 }
 0x14c   :  { %3679 = vmatprep.subr.bf16.mxu1 %v6125_v39 }
 0x14d   :  { %3868 = vmatpush3.bf16.msra.mxu0 %v6127_v46 }
 0x14e   :  { %3869 = vmatprep.subr.bf16.mxu0 %v5955_v17 }
 0x14f   :  { %3681 = vmatpush3.bf16.msra.mxu1 %v6126_v55 }
 0x150   :  { %3683 = vmatprep.subr.bf16.mxu1 %v6128_v42 }
 0x151   :  { %3871 = vmatpush3.bf16.msra.mxu0 %v5204_v62  ;;  %v6136_v62 = vld [vmem:[#allocation100_spill] sm:$0xff] }
 0x152   :  { %3872 = vmatprep.subr.bf16.mxu0 %v5955_v17  ;;  %v6137_v2 = vand.u32 4294901760, %v6136_v62 }
 0x153   :  { %3685 = vmatpush3.bf16.msra.mxu1 %v6129_v50 }
 0x154   :  { %3687 = vmatprep.subr.bf16.mxu1 %v6130_v51 }
 0x155   :  { %3874 = vmatpush3.bf16.msra.mxu0 %v6132_v8 }
 0x156   :  { %3875 = vmatprep.subr.bf16.mxu0 %v5955_v17 }
 0x157   :  { %3689 = vmatpush3.bf16.msra.mxu1 %v6131_v21 }
 0x158   :  { %3691 = vmatprep.subr.bf16.mxu1 %v6133_v33 }
 0x159   :  { %3877 = vmatpush3.bf16.msra.mxu0 %v6135_v52 }
 0x15a   :  { %3878 = vmatprep.subr.bf16.mxu0 %v5955_v17 }
 0x15b   :  { %3693 = vmatpush3.bf16.msra.mxu1 %v6134_v0 }
 0x15c   :  { %3727 = vmatprep.subr.bf16.mxu1 %v6112_v59  ;;  %3337 = vmatmul.mubr.f32.vlgmr.msra.gmra.mrb[6].mxu0 %v6087_v34 }
 0x15d   :  { %3880 = vmatpush3.bf16.msra.mxu0 %v6099_v38  ;;  %3371 = vmatprep.mubr.msk.f32.mxu0 %vm4018_vm0, %v6071_v54  ;;  %v2709_v54 = vpop.f32.mrb[2].mxu1  ;;  %v2954_v12 = vpop.f32.mrb[2].mxu0 }
 0x15e   :  { %1705 = vmatmul.mubr.f32.vlgmr.msra.gmra.mrb[14].mxu1 %v6137_v2  ;;  %3881 = vmatprep.subr.bf16.mxu0 %v5955_v17  ;;  %v2710_v29 = vpop.f32.mrb[3].mxu1  ;;  %v2955_v22 = vpop.f32.mrb[3].mxu0 }
 0x15f   :  { %3729 = vmatpush3.bf16.msra.mxu1 %v6115_v4  ;;  %1975 = vmatprep.mubr.f32.mxu1 %v6101_v14  ;;  %v2711_v24 = vadd.f32 %v2710_v29, %v2709_v54  ;;  %v2956_v19 = vadd.f32 %v2955_v22, %v2954_v12 }
 0x160   :  { %3731 = vmatprep.subr.bf16.mxu1 %v6116_v5 }
 0x161   :  { %3883 = vmatpush3.bf16.msra.mxu0 %v6103_v20  ;;  %v599_v27 = vadd.f32 %v2711_v24, %v2676_v47 }
 0x162   :  { %3884 = vmatprep.subr.bf16.mxu0 %v5955_v17 }
 0x163   :  { %3733 = vmatpush3.bf16.msra.mxu1 %v6119_v49 }
 0x164   :  { %3735 = vmatprep.subr.bf16.mxu1 %v6120_v23 }
 0x165   :  { %3886 = vmatpush3.bf16.msra.mxu0 %v6106_v57 }
 0x166   :  { %3887 = vmatprep.subr.bf16.mxu0 %v5955_v17 }
 0x167   :  { %3737 = vmatpush3.bf16.msra.mxu1 %v6121_v30 }
 0x168   :  { %3739 = vmatprep.subr.bf16.mxu1 %v6122_v41 }
 0x169   :  { %3889 = vmatpush3.bf16.msra.mxu0 %v6109_v45 }
 0x16a   :  { %3890 = vmatprep.subr.bf16.mxu0 %v5955_v17 }
 0x16b   :  { %3741 = vmatpush3.bf16.msra.mxu1 %v6123_v37 }
 0x16c   :  { %3743 = vmatprep.subr.bf16.mxu1 %v6125_v39 }
 0x16d   :  { %3892 = vmatpush3.bf16.msra.mxu0 %v6110_v15 }
 0x16e   :  { %3893 = vmatprep.subr.bf16.mxu0 %v5955_v17 }
 0x16f   :  { %3745 = vmatpush3.bf16.msra.mxu1 %v6126_v55 }
 0x170   :  { %3747 = vmatprep.subr.bf16.mxu1 %v6128_v42 }
 0x171   :  { %3895 = vmatpush3.bf16.msra.mxu0 %v6111_v58 }
 0x172   :  { %3896 = vmatprep.subr.bf16.mxu0 %v5955_v17 }
 0x173   :  { %3749 = vmatpush3.bf16.msra.mxu1 %v6129_v50 }
 0x174   :  { %3751 = vmatprep.subr.bf16.mxu1 %v6130_v51 }
 0x175   :  { %3898 = vmatpush3.bf16.msra.mxu0 %v4982_v13 }
 0x176   :  { %3899 = vmatprep.subr.bf16.mxu0 %v5955_v17 }
 0x177   :  { %3753 = vmatpush3.bf16.msra.mxu1 %v6131_v21 }
 0x178   :  { %3755 = vmatprep.subr.bf16.mxu1 %v6133_v33 }
 0x179   :  { %3901 = vmatpush3.bf16.msra.mxu0 %v4991_v6 }
 0x17b   :  { %3757 = vmatpush3.bf16.msra.mxu1 %v6134_v0 }
 0x17c   :  { %3372 = vmatmul.mubr.f32.vlgmr.msra.gmra.mrb[6].mxu0 %v6087_v34 }
 0x17e   :  { %1977 = vmatmul.mubr.f32.vlgmr.msra.gmra.mrb[16].mxu1 %v6113_v40 }
 0x181   :  { %v3024_v10 = vpop.f32.mrb[4].mxu0 }
 0x182   :  { %v3025_v1 = vpop.f32.mrb[5].mxu0 }
 0x183   :  { %v2744_v44 = vpop.f32.mrb[4].mxu1  ;;  %v3026_v61 = vadd.f32 %v3025_v1, %v3024_v10 }
 0x184   :  { %v2745_v3 = vpop.f32.mrb[5].mxu1 }
 0x185   :  { %v2746_v36 = vadd.f32 %v2745_v3, %v2744_v44 }
 0x187   :  { %v737_v32 = vadd.f32 %v2746_v36, %v599_v27 }
 0x1b1   :  { %v2779_v13 = vpop.f32.mrb[6].mxu1 }
 0x1b2   :  { %v2780_v48 = vpop.f32.mrb[7].mxu1 }
 0x1b3   :  { %v2781_v38 = vadd.f32 %v2780_v48, %v2779_v13 }
 0x1b5   :  { %v845_v35 = vadd.f32 %v2781_v38, %v737_v32 }
 0x1d1   :  { %v2814_v17 = vpop.f32.mrb[8].mxu1 }
 0x1d2   :  { %v2815_v14 = vpop.f32.mrb[9].mxu1 }
 0x1d3   :  { %v2816_v16 = vadd.f32 %v2815_v14, %v2814_v17 }
 0x1d5   :  { %v1013_v20 = vadd.f32 %v2816_v16, %v845_v35 }
 0x1f1   :  { %v2849_v6 = vpop.f32.mrb[10].mxu1 }
 0x1f2   :  { %v2850_v25 = vpop.f32.mrb[11].mxu1 }
 0x1f3   :  { %v2851_v63 = vadd.f32 %v2850_v25, %v2849_v6 }
 0x1f5   :  { %v1117_v57 = vadd.f32 %v2851_v63, %v1013_v20 }
 0x1f7   :  { %v1229_v34 = vadd.f32 %v5409_v43, %v1117_v57 }
 0x211   :  { %v2919_v56 = vpop.f32.mrb[12].mxu1 }
 0x212   :  { %v2920_v18 = vpop.f32.mrb[13].mxu1 }
 0x213   :  { %v2921_v45 = vadd.f32 %v2920_v18, %v2919_v56 }
 0x215   :  { %v1461_v15 = vadd.f32 %v2921_v45, %v1229_v34 }
 0x217   :  { %v1599_v58 = vadd.f32 %v2956_v19, %v1461_v15 }
 0x231   :  { %v2989_v59 = vpop.f32.mrb[14].mxu1 }
 0x232   :  { %v2990_v40 = vpop.f32.mrb[15].mxu1 }
 0x233   :  { %v2991_v26 = vadd.f32 %v2990_v40, %v2989_v59 }
 0x235   :  { %v1707_v4 = vadd.f32 %v2991_v26, %v1599_v58 }
 0x237   :  { %v1875_v5 = vadd.f32 %v3026_v61, %v1707_v4 }
 0x24f   :  { %v2619_v9 = vpop.f32.mrb[6].mxu0 }
 0x250   :  { %v3373_v23 = vpop.f32.mrb[7].mxu0 }
 0x251   :  { %v3059_v60 = vpop.f32.mrb[16].mxu1 }
 0x252   :  { %v3060_v49 = vpop.f32.mrb[17].mxu1 }
 0x253   :  { %v3061_v30 = vadd.f32 %v3060_v49, %v3059_v60 }
 0x255   :  { %v1979_v41 = vadd.f32 %v3061_v30, %v1875_v5 }
 0x257   :  { %v3902_v37 = vadd.f32 %v2619_v9, %v1979_v41 }
 0x259   :  { %2623 = vst [vmem:[#allocation7] sm:$0xff] %v3902_v37 }
 0x25a   :  { %2628 = vsyncadd [#allocation4], 112  ;;  %s4020_s1 = smov [#allocation7]  }
 0x25b   :  { %s2629_s9 = sshll.u32 %s4020_s1, 4  ;;  %s2630_s9 = int_to_ptr.vmem [resolvable:$true] %s2629_s9 }
 0x25c   :  { %s3982_s10 = scalar_lea.vmem %s2630_s9, 16  ;;  %s3986_s11 = scalar_lea.vmem %s2630_s9, 128 }
 0x25d   :  { %p3983_p2 = scmp.ne.s32.totalorder %s2630_s9, %s3982_s10  ;;  %p3987_p3 = scmp.lt.s32.totalorder %s2630_s9, %s2630_s9 }
 0x25e   :  { %p3988_p4 = scmp.lt.s32.totalorder %s3986_s11, %s3982_s10 }
 0x260   :  { %p3989_p5 = por %p3988_p4, %p3987_p3 }
 0x262   :  { %p3990_p6 = pnand %p3989_p5, %p3983_p2 }
 0x264   :  { %3993 = shalt.err (!%p3990_p6)
}
 0x265   :  { %s3994_s14 = scalar_lea.hbm %s5474_s2, 16 }
 0x266   :  { %p3995_p7 = scmp.ne.s32.totalorder %s5474_s2, %s3994_s14  ;;  %p3998_p8 = scmp.lt.u32.totalorder %s3994_s14, %s5474_s2 }
 0x268   :  { %p4000_p9 = pnand %p3998_p8, %p3995_p7 }
 0x26a   :  { %4003 = shalt.err (!%p4000_p9)
}
 0x26b   :  { %s4021_s19 = smov 16   ;;  %s4022_s20 = smov 1  }
 0x26c   :  { %2635 = dma.vmem_to_hbm [thread:$0]  %s2630_s9, 16, %s5474_s2, [#allocation4], %s4021_s19, %s4021_s19, %s4022_s20  }
 0x26d   :  { %4008 = dma.done.wait [#allocation4], 128  }
 0x26e   :  { %4009 = vsyncadd [#allocation4], 4294967168 }
 0x26f   :  { %2639 = vsyncpa [#allocation3], 1 }
 0x270   :  { %2640 = vsyncpa [#allocation6], 1 }
 0x271   :  { %2641 = vsyncpa [#allocation4], 1 }

</bundles_post_ra>
